<compile_context>
chip_gen: v5e
topology: v5e:2x2
jax: 0.10.0
libtpu: 0.0.40
codegen_flags: <defaults>
</compile_context>

<pallas_src>
import functools

import jax
import jax.numpy as jnp
from jax.experimental import pallas as pl
from jax.experimental.pallas import tpu as pltpu


# ----------------------------------------------------------------------------
# In-kernel GroupNorm on a channels-major (C, HW) tile of ONE sample
# ----------------------------------------------------------------------------
def _group_norm_cmajor(h, gamma, beta, member, member_t, count, eps=1e-5):
    """PyTorch nn.GroupNorm semantics (biased variance, eps=1e-5).

    h:          (C, HW) f32, channels on sublanes, flat spatial on lanes.
    gamma/beta: (C, 1) f32
    member:     (G, C) one-hot group membership (precomputed on host).
    member_t:   (C, G)
    count:      float, HW * channels_per_group.
    """
    s1 = jnp.sum(h, axis=1, keepdims=True)                                   # (C, 1)
    s2 = jnp.sum(h * h, axis=1, keepdims=True)                               # (C, 1)
    gmean = jnp.dot(member, s1, preferred_element_type=jnp.float32) / count  # (G, 1)
    gmsq = jnp.dot(member, s2, preferred_element_type=jnp.float32) / count   # (G, 1)
    gvar = jnp.maximum(gmsq - gmean * gmean, 0.0)        # clamp E[x^2]-E[x]^2 cancellation
    ginv = jax.lax.rsqrt(gvar + eps)
    mean_c = jnp.dot(member_t, gmean, preferred_element_type=jnp.float32)    # (C, 1)
    inv_c = jnp.dot(member_t, ginv, preferred_element_type=jnp.float32)      # (C, 1)
    # Fold normalize + affine into one per-channel scale/shift:
    #   (h - mean)*inv*gamma + beta  ==  h*scale + shift
    scale = inv_c * gamma                                                    # (C, 1)
    shift = beta - mean_c * scale                                            # (C, 1)
    return h * scale + shift


# ----------------------------------------------------------------------------
# Fused kernel: one bottleneck block per grid step, accumulated into out_ref
# ----------------------------------------------------------------------------
def _agg_kernel(img_w,
                layer_ids_ref,                               # scalar prefetch (SMEM)
                x_ref,                                       # (1, fd, HW)
                w1t_ref, g1_ref, b1_ref,
                w2m_ref, g2_ref, b2_ref,
                w3t_ref, g3_ref, b3_ref,
                wst_ref, gs_ref, bs_ref,
                memb_b_ref, membt_b_ref, memb_o_ref, membt_o_ref,
                mask_ref,                                    # (9, HW)
                out_ref):                                    # (1, Cout, HW) accumulator
    del layer_ids_ref                                        # only used by the index_maps
    i = pl.program_id(1)

    @pl.when(i == 0)
    def _init():
        out_ref[...] = jnp.zeros_like(out_ref)

    x = x_ref[0]                                             # (fd, HW), storage dtype
    hw = x.shape[1]
    cb = w1t_ref.shape[1]
    cout = w3t_ref.shape[1]
    groups = memb_b_ref.shape[0]
    mm_dtype = x.dtype
    cnt_b = float(hw * (cb // groups))
    cnt_o = float(hw * (cout // groups))

    memb_b, membt_b = memb_b_ref[...], membt_b_ref[...]
    memb_o, membt_o = memb_o_ref[...], membt_o_ref[...]
    mask = mask_ref[...].astype(mm_dtype)                    # (9, HW)

    # --- conv1 (1x1, no bias) + GN + ReLU ------------------------------------
    h1 = jnp.dot(w1t_ref[0], x, preferred_element_type=jnp.float32)          # (Cb, HW)
    h1 = _group_norm_cmajor(h1, g1_ref[0], b1_ref[0], memb_b, membt_b, cnt_b)
    h1 = jnp.maximum(h1, 0.0)

    # --- conv2 (3x3, padding=1, no bias) as ONE im2col matmul ----------------
    # Each tap = circular lane shift of h1 by dy*W+dx, with out-of-image
    # positions zeroed by a precomputed border mask (no padded scratch,
    # no per-step memset).  Cast once to the MXU dtype before shifting so the
    # shift/mask traffic is already in the narrow dtype when bf16 is used.
    h1m = h1.astype(mm_dtype)                                # (Cb, HW)
    pieces = []
    tap = 0
    for dy in (-1, 0, 1):
        for dx in (-1, 0, 1):
            d = (dy * img_w + dx) % hw
            sh = h1m if d == 0 else jnp.concatenate([h1m[:, d:], h1m[:, :d]], axis=1)
            if dy != 0 or dx != 0:
                sh = sh * mask[tap:tap + 1, :]
            pieces.append(sh)
            tap += 1
    im2col = jnp.concatenate(pieces, axis=0)                                 # (9*Cb, HW)
    h2 = jnp.dot(w2m_ref[0], im2col, preferred_element_type=jnp.float32)     # (Cb, HW)
    h2 = _group_norm_cmajor(h2, g2_ref[0], b2_ref[0], memb_b, membt_b, cnt_b)
    h2 = jnp.maximum(h2, 0.0)

    # --- conv3 (1x1) + GN (mixing weight pre-folded into gamma/beta) ---------
    h3 = jnp.dot(w3t_ref[0], h2.astype(mm_dtype),
                 preferred_element_type=jnp.float32)                          # (Cout, HW)
    h3 = _group_norm_cmajor(h3, g3_ref[0], b3_ref[0], memb_o, membt_o, cnt_o)

    # --- shortcut 1x1 conv + GN (mixing weight pre-folded) -------------------
    sc = jnp.dot(wst_ref[0], x, preferred_element_type=jnp.float32)           # (Cout, HW)
    sc = _group_norm_cmajor(sc, gs_ref[0], bs_ref[0], memb_o, membt_o, cnt_o)

    # mix * relu(a + b) == relu(mix*a + mix*b) since softmax mix > 0; mix is
    # already folded into (g3, b3, gs, bs) on the host side.
    out_ref[0] = out_ref[0] + jnp.maximum(h3 + sc, 0.0)


# ----------------------------------------------------------------------------
# Host-side constant helpers
# ----------------------------------------------------------------------------
def _group_members(c, groups):
    cidx = jnp.arange(c, dtype=jnp.int32)
    gidx = jnp.arange(groups, dtype=jnp.int32)
    member = (cidx[None, :] // (c // groups) == gidx[:, None]).astype(jnp.float32)
    return member, member.T                                  # (G, C), (C, G)


def _conv3x3_border_mask(h, w):
    p = jnp.arange(h * w, dtype=jnp.int32)
    yy, xx = p // w, p % w
    rows = []
    for dy in (-1, 0, 1):
        for dx in (-1, 0, 1):
            ok = (yy + dy >= 0) & (yy + dy < h) & (xx + dx >= 0) & (xx + dx < w)
            rows.append(ok.astype(jnp.float32))
    return jnp.stack(rows, axis=0)                           # (9, HW)


# ----------------------------------------------------------------------------
# AggregationNetwork forward (NCHW in / NCHW out, like the PyTorch module)
# ----------------------------------------------------------------------------
@functools.partial(jax.jit, static_argnames=("feature_dims", "projection_dim",
                                             "num_norm_groups", "compute_dtype"))
def aggregation_network_forward(batch_nchw, params, feature_dims, projection_dim,
                                num_norm_groups, compute_dtype=jnp.float32):
    B, Ctot, H, W = batch_nchw.shape
    nl = len(feature_dims)
    fd = feature_dims[0]
    # TODO(synk): unequal feature_dims would need per-dim block shapes (one
    # pallas_call per distinct dim); the module default [768, 768] is equal.
    assert all(f == fd for f in feature_dims)
    L = params["mixing_weights"].shape[0]
    assert Ctot == fd * L
    HW = H * W
    Cb = projection_dim // 4
    Cout = projection_dim
    G = num_norm_groups

    # Stay in NCHW; just flatten spatial so H*W lands on the lane axis (free reshape).
    x = batch_nchw.reshape(B, Ctot, HW).astype(compute_dtype)

    mixing = jax.nn.softmax(params["mixing_weights"].astype(jnp.float32))
    layer_ids = jnp.arange(L, dtype=jnp.int32) % nl

    blocks = params["blocks"]
    stack = lambda fn: jnp.stack([fn(p) for p in blocks], axis=0)
    w1t = stack(lambda p: p["w1"].T).astype(compute_dtype)                       # (nl, Cb, fd)
    w2m = stack(lambda p: p["w2"].reshape(9 * Cb, Cb).T).astype(compute_dtype)   # (nl, Cb, 9*Cb)
    w3t = stack(lambda p: p["w3"].T).astype(compute_dtype)                       # (nl, Cout, Cb)
    wst = stack(lambda p: p["ws"].T).astype(compute_dtype)                       # (nl, Cout, fd)
    g1 = stack(lambda p: p["g1"].reshape(Cb, 1))
    b1 = stack(lambda p: p["b1"].reshape(Cb, 1))
    g2 = stack(lambda p: p["g2"].reshape(Cb, 1))
    b2 = stack(lambda p: p["b2"].reshape(Cb, 1))
    # Mixing weights folded into the two final GroupNorm affines, stacked per
    # mixing index (length L); the heavy weights are stacked per unique layer.
    g3 = jnp.stack([mixing[i] * blocks[i % nl]["g3"].reshape(Cout, 1) for i in range(L)])
    b3 = jnp.stack([mixing[i] * blocks[i % nl]["b3"].reshape(Cout, 1) for i in range(L)])
    gs = jnp.stack([mixing[i] * blocks[i % nl]["gs"].reshape(Cout, 1) for i in range(L)])
    bs = jnp.stack([mixing[i] * blocks[i % nl]["bs"].reshape(Cout, 1) for i in range(L)])

    memb_b, membt_b = _group_members(Cb, G)
    memb_o, membt_o = _group_members(Cout, G)
    mask = _conv3x3_border_mask(H, W)

    per_layer = lambda *s: pl.BlockSpec((1,) + s, lambda b, i, lids: (lids[i], 0, 0))
    per_mix = lambda *s: pl.BlockSpec((1,) + s, lambda b, i, lids: (i, 0, 0))
    shared = lambda *s: pl.BlockSpec(s, lambda b, i, lids: (0,) * len(s))

    # TODO(synk): for production sizes (H=W=64, fd up to 1280) on v7x (64 MiB
    # VMEM), tile the HW axis spatially (with a 1-row halo for conv2) instead
    # of taking a whole image per grid step.
    grid_spec = pltpu.PrefetchScalarGridSpec(
        num_scalar_prefetch=1,                               # layer-id table (int32)
        grid=(B, L),                                         # B parallel, layer loop arbitrary
        in_specs=[
            pl.BlockSpec((1, fd, HW), lambda b, i, lids: (b, i, 0)),   # feature slice i
            per_layer(Cb, fd), per_layer(Cb, 1), per_layer(Cb, 1),
            per_layer(Cb, 9 * Cb), per_layer(Cb, 1), per_layer(Cb, 1),
            per_layer(Cout, Cb), per_mix(Cout, 1), per_mix(Cout, 1),
            per_layer(Cout, fd), per_mix(Cout, 1), per_mix(Cout, 1),
            shared(G, Cb), shared(Cb, G), shared(G, Cout), shared(Cout, G),
            shared(9, HW),
        ],
        out_specs=pl.BlockSpec((1, Cout, HW), lambda b, i, lids: (b, 0, 0)),
    )

    out = pl.pallas_call(
        functools.partial(_agg_kernel, W),
        out_shape=jax.ShapeDtypeStruct((B, Cout, HW), jnp.float32),
        grid_spec=grid_spec,
        compiler_params=pltpu.CompilerParams(
            dimension_semantics=("parallel", "arbitrary")),
    )(layer_ids, x,
      w1t, g1, b1, w2m, g2, b2, w3t, g3, b3, wst, gs, bs,
      memb_b, membt_b, memb_o, membt_o, mask)

    return out.reshape(B, Cout, H, W)


# ----------------------------------------------------------------------------
# Deterministic synthetic parameter init (shapes follow the module __init__)
# ----------------------------------------------------------------------------
def init_params(key, feature_dims, projection_dim, save_timestep):
    Cb = projection_dim // 4
    blocks = []
    keys = jax.random.split(key, len(feature_dims))
    for l, fdim in enumerate(feature_dims):
        ks = jax.random.split(keys[l], 4)
        blocks.append(dict(
            w1=0.05 * jax.random.normal(ks[0], (fdim, Cb), jnp.float32),
            g1=jnp.ones((Cb,), jnp.float32), b1=jnp.zeros((Cb,), jnp.float32),
            w2=0.05 * jax.random.normal(ks[1], (3, 3, Cb, Cb), jnp.float32),
            g2=jnp.ones((Cb,), jnp.float32), b2=jnp.zeros((Cb,), jnp.float32),
            w3=0.05 * jax.random.normal(ks[2], (Cb, projection_dim), jnp.float32),
            g3=jnp.ones((projection_dim,), jnp.float32),
            b3=jnp.zeros((projection_dim,), jnp.float32),
            ws=0.05 * jax.random.normal(ks[3], (fdim, projection_dim), jnp.float32),
            gs=jnp.ones((projection_dim,), jnp.float32),
            bs=jnp.zeros((projection_dim,), jnp.float32),
        ))
    mixing = jnp.ones((len(feature_dims) * len(save_timestep),), jnp.float32)
    return dict(blocks=blocks, mixing_weights=mixing)


# ----------------------------------------------------------------------------
# Pure-JAX reference (for numeric verification)
# ----------------------------------------------------------------------------
def reference_forward(batch_nchw, params, feature_dims, projection_dim, groups):
    x = jnp.transpose(batch_nchw, (0, 2, 3, 1)).astype(jnp.float32)

    def gn(v, gamma, beta, eps=1e-5):
        B, H, W, C = v.shape
        vg = v.reshape(B, H, W, groups, C // groups)
        mean = vg.mean(axis=(1, 2, 4), keepdims=True)
        var = ((vg - mean) ** 2).mean(axis=(1, 2, 4), keepdims=True)
        vn = ((vg - mean) / jnp.sqrt(var + eps)).reshape(B, H, W, C)
        return vn * gamma.reshape(1, 1, 1, C) + beta.reshape(1, 1, 1, C)

    def block(v, p):
        h = jnp.einsum("bhwc,cd->bhwd", v, p["w1"])
        h = jax.nn.relu(gn(h, p["g1"], p["b1"]))
        h = jax.lax.conv_general_dilated(
            h, p["w2"], (1, 1), "SAME",
            dimension_numbers=("NHWC", "HWIO", "NHWC"))
        h = jax.nn.relu(gn(h, p["g2"], p["b2"]))
        h = gn(jnp.einsum("bhwc,cd->bhwd", h, p["w3"]), p["g3"], p["b3"])
        s = gn(jnp.einsum("bhwc,cd->bhwd", v, p["ws"]), p["gs"], p["bs"])
        return jax.nn.relu(h + s)

    mixing = jax.nn.softmax(params["mixing_weights"])
    out, start = None, 0
    for i in range(params["mixing_weights"].shape[0]):
        l = i % len(feature_dims)
        end = start + feature_dims[l]
        feats = x[..., start:end]
        start = end
        y = mixing[i] * block(feats, params["blocks"][l])
        out = y if out is None else out + y
    return jnp.transpose(out, (0, 3, 1, 2))


# ----------------------------------------------------------------------------
if __name__ == "__main__":
    # Small configuration consistent with the module:
    #   feature_dims=[32, 32], projection_dim=32 (bottleneck=8),
    #   num_norm_groups=4, save_timestep=[1], kernel_size=[1, 3, 1]
    feature_dims = (32, 32)
    projection_dim = 32
    num_norm_groups = 4
    save_timestep = (1,)
    B, H, W = 2, 16, 16
    Ctot = sum(feature_dims) * len(save_timestep)

    key = jax.random.PRNGKey(0)
    k_in, k_par = jax.random.split(key)
    batch = jax.random.normal(k_in, (B, Ctot, H, W), jnp.float32)  # NCHW input
    params = init_params(k_par, feature_dims, projection_dim, save_timestep)

    out = aggregation_network_forward(batch, params, feature_dims,
                                      projection_dim, num_norm_groups)
    out = jax.block_until_ready(out)

    assert out.shape == (B, projection_dim, H, W), out.shape

    ref = reference_forward(batch, params, feature_dims, projection_dim,
                            num_norm_groups)
    ref = jax.block_until_ready(ref)
    if not jnp.allclose(out, ref, atol=1e-3, rtol=1e-3):
        raise AssertionError(
            f"mismatch vs reference: max abs diff = {jnp.max(jnp.abs(out - ref))}")

    print("KERNEL_OK")
</pallas_src>

<mosaic_0001>
module attributes {stable_mosaic.version = 11 : i64} {
  func.func @_agg_kernel(%arg0: i32, %arg1: i32, %arg2: memref<2xi32, #tpu.memory_space<smem>>, %arg3: memref<1x32x256xf32, #tpu.memory_space<vmem>>, %arg4: memref<1x8x32xf32, #tpu.memory_space<vmem>>, %arg5: memref<1x8x1xf32, #tpu.memory_space<vmem>>, %arg6: memref<1x8x1xf32, #tpu.memory_space<vmem>>, %arg7: memref<1x8x72xf32, #tpu.memory_space<vmem>>, %arg8: memref<1x8x1xf32, #tpu.memory_space<vmem>>, %arg9: memref<1x8x1xf32, #tpu.memory_space<vmem>>, %arg10: memref<1x32x8xf32, #tpu.memory_space<vmem>>, %arg11: memref<1x32x1xf32, #tpu.memory_space<vmem>>, %arg12: memref<1x32x1xf32, #tpu.memory_space<vmem>>, %arg13: memref<1x32x32xf32, #tpu.memory_space<vmem>>, %arg14: memref<1x32x1xf32, #tpu.memory_space<vmem>>, %arg15: memref<1x32x1xf32, #tpu.memory_space<vmem>>, %arg16: memref<4x8xf32, #tpu.memory_space<vmem>>, %arg17: memref<8x4xf32, #tpu.memory_space<vmem>>, %arg18: memref<4x32xf32, #tpu.memory_space<vmem>>, %arg19: memref<32x4xf32, #tpu.memory_space<vmem>>, %arg20: memref<9x256xf32, #tpu.memory_space<vmem>>, %arg21: memref<1x32x256xf32, #tpu.memory_space<vmem>>) attributes {dimension_semantics = [#tpu.dimension_semantics<parallel>, #tpu.dimension_semantics<arbitrary>], iteration_bounds = array<i64: 2, 2>, scalar_prefetch = 1 : i64, scratch_operands = 0 : i64, tpu.core_type = #tpu.core_type<tc>, window_params = [{transform_indices = @transform_0, window_bounds = array<i64: 1, 32, 256>}, {transform_indices = @transform_1, window_bounds = array<i64: 1, 8, 32>}, {transform_indices = @transform_2, window_bounds = array<i64: 1, 8, 1>}, {transform_indices = @transform_3, window_bounds = array<i64: 1, 8, 1>}, {transform_indices = @transform_4, window_bounds = array<i64: 1, 8, 72>}, {transform_indices = @transform_5, window_bounds = array<i64: 1, 8, 1>}, {transform_indices = @transform_6, window_bounds = array<i64: 1, 8, 1>}, {transform_indices = @transform_7, window_bounds = array<i64: 1, 32, 8>}, {transform_indices = @transform_8, window_bounds = array<i64: 1, 32, 1>}, {transform_indices = @transform_9, window_bounds = array<i64: 1, 32, 1>}, {transform_indices = @transform_10, window_bounds = array<i64: 1, 32, 32>}, {transform_indices = @transform_11, window_bounds = array<i64: 1, 32, 1>}, {transform_indices = @transform_12, window_bounds = array<i64: 1, 32, 1>}, {pipeline_mode = #tpu.pipeline_mode<synchronous>, transform_indices = @transform_13, window_bounds = array<i64: 4, 8>}, {pipeline_mode = #tpu.pipeline_mode<synchronous>, transform_indices = @transform_14, window_bounds = array<i64: 8, 4>}, {pipeline_mode = #tpu.pipeline_mode<synchronous>, transform_indices = @transform_15, window_bounds = array<i64: 4, 32>}, {pipeline_mode = #tpu.pipeline_mode<synchronous>, transform_indices = @transform_16, window_bounds = array<i64: 32, 4>}, {pipeline_mode = #tpu.pipeline_mode<synchronous>, transform_indices = @transform_17, window_bounds = array<i64: 9, 256>}, {transform_indices = @transform_18, window_bounds = array<i64: 1, 32, 256>}]} {
    %c0_i32 = arith.constant 0 : i32
    %0 = arith.cmpi eq, %arg1, %c0_i32 : i32
    %1 = arith.extui %0 : i1 to i32
    %c0_i32_0 = arith.constant 0 : i32
    %2 = arith.cmpi ne, %1, %c0_i32_0 : i32
    scf.if %2 {
      %cst_101 = arith.constant 0.000000e+00 : f32
      %208 = vector.broadcast %cst_101 : f32 to vector<1x32x256xf32>
      %c0_102 = arith.constant 0 : index
      %c0_103 = arith.constant 0 : index
      %c0_104 = arith.constant 0 : index
      %209 = vector.load %arg21[%c0_102, %c0_103, %c0_104] : memref<1x32x256xf32, #tpu.memory_space<vmem>>, vector<1x32x256xf32>
      tpu.vector_store %arg21[%c0_102, %c0_103, %c0_104], %208 {strides = array<i32>} : memref<1x32x256xf32, #tpu.memory_space<vmem>>, vector<1x32x256xf32>,
    } else {
    }
    %c0 = arith.constant 0 : index
    %c0_1 = arith.constant 0 : index
    %c0_2 = arith.constant 0 : index
    %3 = vector.load %arg3[%c0, %c0_1, %c0_2] : memref<1x32x256xf32, #tpu.memory_space<vmem>>, vector<1x32x256xf32>
    %4 = vector.shape_cast %3 : vector<1x32x256xf32> to vector<32x256xf32>
    %c0_3 = arith.constant 0 : index
    %c0_4 = arith.constant 0 : index
    %5 = vector.load %arg16[%c0_3, %c0_4] : memref<4x8xf32, #tpu.memory_space<vmem>>, vector<4x8xf32>
    %c0_5 = arith.constant 0 : index
    %c0_6 = arith.constant 0 : index
    %6 = vector.load %arg17[%c0_5, %c0_6] : memref<8x4xf32, #tpu.memory_space<vmem>>, vector<8x4xf32>
    %c0_7 = arith.constant 0 : index
    %c0_8 = arith.constant 0 : index
    %7 = vector.load %arg18[%c0_7, %c0_8] : memref<4x32xf32, #tpu.memory_space<vmem>>, vector<4x32xf32>
    %c0_9 = arith.constant 0 : index
    %c0_10 = arith.constant 0 : index
    %8 = vector.load %arg19[%c0_9, %c0_10] : memref<32x4xf32, #tpu.memory_space<vmem>>, vector<32x4xf32>
    %c0_11 = arith.constant 0 : index
    %c0_12 = arith.constant 0 : index
    %9 = vector.load %arg20[%c0_11, %c0_12] : memref<9x256xf32, #tpu.memory_space<vmem>>, vector<9x256xf32>
    %c0_13 = arith.constant 0 : index
    %c0_14 = arith.constant 0 : index
    %c0_15 = arith.constant 0 : index
    %10 = vector.load %arg4[%c0_13, %c0_14, %c0_15] : memref<1x8x32xf32, #tpu.memory_space<vmem>>, vector<1x8x32xf32>
    %11 = vector.shape_cast %10 : vector<1x8x32xf32> to vector<8x32xf32>
    %cst = arith.constant dense<0.000000e+00> : vector<8x256xf32>
    %12 = tpu.matmul %11, %4, %cst {dimension_numbers = #tpu.dot_dimension_numbers<[1], [0], [0], [1], [0, 0, 1, 1], [], []>} : vector<8x32xf32>, vector<32x256xf32>, vector<8x256xf32> -> vector<8x256xf32>
    %c0_16 = arith.constant 0 : index
    %c0_17 = arith.constant 0 : index
    %c0_18 = arith.constant 0 : index
    %13 = vector.load %arg5[%c0_16, %c0_17, %c0_18] : memref<1x8x1xf32, #tpu.memory_space<vmem>>, vector<1x8x1xf32>
    %14 = vector.shape_cast %13 : vector<1x8x1xf32> to vector<8x1xf32>
    %c0_19 = arith.constant 0 : index
    %c0_20 = arith.constant 0 : index
    %c0_21 = arith.constant 0 : index
    %15 = vector.load %arg6[%c0_19, %c0_20, %c0_21] : memref<1x8x1xf32, #tpu.memory_space<vmem>>, vector<1x8x1xf32>
    %16 = vector.shape_cast %15 : vector<1x8x1xf32> to vector<8x1xf32>
    %cst_22 = arith.constant dense<0.000000e+00> : vector<8xf32>
    %17 = vector.multi_reduction <add>, %12, %cst_22 [1] : vector<8x256xf32> to vector<8xf32>
    %18 = vector.shape_cast %17 : vector<8xf32> to vector<8x1xf32>
    %19 = arith.mulf %12, %12 : vector<8x256xf32>
    %cst_23 = arith.constant dense<0.000000e+00> : vector<8xf32>
    %20 = vector.multi_reduction <add>, %19, %cst_23 [1] : vector<8x256xf32> to vector<8xf32>
    %21 = vector.shape_cast %20 : vector<8xf32> to vector<8x1xf32>
    %cst_24 = arith.constant dense<0.000000e+00> : vector<4x1xf32>
    %22 = tpu.matmul %5, %18, %cst_24 {dimension_numbers = #tpu.dot_dimension_numbers<[1], [0], [0], [1], [0, 0, 1, 1], [], []>} : vector<4x8xf32>, vector<8x1xf32>, vector<4x1xf32> -> vector<4x1xf32>
    %cst_25 = arith.constant 5.120000e+02 : f32
    %23 = vector.broadcast %cst_25 : f32 to vector<4x1xf32>
    %24 = arith.divf %22, %23 : vector<4x1xf32>
    %cst_26 = arith.constant dense<0.000000e+00> : vector<4x1xf32>
    %25 = tpu.matmul %5, %21, %cst_26 {dimension_numbers = #tpu.dot_dimension_numbers<[1], [0], [0], [1], [0, 0, 1, 1], [], []>} : vector<4x8xf32>, vector<8x1xf32>, vector<4x1xf32> -> vector<4x1xf32>
    %cst_27 = arith.constant 5.120000e+02 : f32
    %26 = vector.broadcast %cst_27 : f32 to vector<4x1xf32>
    %27 = arith.divf %25, %26 : vector<4x1xf32>
    %28 = arith.mulf %24, %24 : vector<4x1xf32>
    %29 = arith.subf %27, %28 : vector<4x1xf32>
    %cst_28 = arith.constant 0.000000e+00 : f32
    %30 = vector.broadcast %cst_28 : f32 to vector<4x1xf32>
    %31 = arith.maximumf %29, %30 : vector<4x1xf32>
    %cst_29 = arith.constant 9.99999974E-6 : f32
    %32 = vector.broadcast %cst_29 : f32 to vector<4x1xf32>
    %33 = arith.addf %31, %32 : vector<4x1xf32>
    %34 = math.rsqrt %33 : vector<4x1xf32>
    %cst_30 = arith.constant dense<0.000000e+00> : vector<8x1xf32>
    %35 = tpu.matmul %6, %24, %cst_30 {dimension_numbers = #tpu.dot_dimension_numbers<[1], [0], [0], [1], [0, 0, 1, 1], [], []>} : vector<8x4xf32>, vector<4x1xf32>, vector<8x1xf32> -> vector<8x1xf32>
    %cst_31 = arith.constant dense<0.000000e+00> : vector<8x1xf32>
    %36 = tpu.matmul %6, %34, %cst_31 {dimension_numbers = #tpu.dot_dimension_numbers<[1], [0], [0], [1], [0, 0, 1, 1], [], []>} : vector<8x4xf32>, vector<4x1xf32>, vector<8x1xf32> -> vector<8x1xf32>
    %37 = arith.mulf %36, %14 : vector<8x1xf32>
    %38 = arith.mulf %35, %37 : vector<8x1xf32>
    %39 = arith.subf %16, %38 : vector<8x1xf32>
    %40 = vector.broadcast %37 : vector<8x1xf32> to vector<8x256xf32>
    %41 = arith.mulf %12, %40 : vector<8x256xf32>
    %42 = vector.broadcast %39 : vector<8x1xf32> to vector<8x256xf32>
    %43 = arith.addf %41, %42 : vector<8x256xf32>
    %cst_32 = arith.constant 0.000000e+00 : f32
    %44 = vector.broadcast %cst_32 : f32 to vector<8x256xf32>
    %45 = arith.maximumf %43, %44 : vector<8x256xf32>
    %46 = vector.extract_strided_slice %45 {offsets = [0, 239], sizes = [8, 17], strides = [1, 1]} : vector<8x256xf32> to vector<8x17xf32>
    %47 = vector.extract_strided_slice %45 {offsets = [0, 0], sizes = [8, 239], strides = [1, 1]} : vector<8x256xf32> to vector<8x239xf32>
    %48 = tpu.concatenate %46, %47 in 1 : vector<8x17xf32>, vector<8x239xf32> -> vector<8x256xf32>
    %49 = vector.extract_strided_slice %9 {offsets = [0, 0], sizes = [1, 256], strides = [1, 1]} : vector<9x256xf32> to vector<1x256xf32>
    %50 = vector.broadcast %49 : vector<1x256xf32> to vector<8x256xf32>
    %51 = arith.mulf %48, %50 : vector<8x256xf32>
    %52 = vector.extract_strided_slice %45 {offsets = [0, 240], sizes = [8, 16], strides = [1, 1]} : vector<8x256xf32> to vector<8x16xf32>
    %53 = vector.extract_strided_slice %45 {offsets = [0, 0], sizes = [8, 240], strides = [1, 1]} : vector<8x256xf32> to vector<8x240xf32>
    %54 = tpu.concatenate %52, %53 in 1 : vector<8x16xf32>, vector<8x240xf32> -> vector<8x256xf32>
    %55 = vector.extract_strided_slice %9 {offsets = [1, 0], sizes = [1, 256], strides = [1, 1]} : vector<9x256xf32> to vector<1x256xf32>
    %56 = vector.broadcast %55 : vector<1x256xf32> to vector<8x256xf32>
    %57 = arith.mulf %54, %56 : vector<8x256xf32>
    %58 = vector.extract_strided_slice %45 {offsets = [0, 241], sizes = [8, 15], strides = [1, 1]} : vector<8x256xf32> to vector<8x15xf32>
    %59 = vector.extract_strided_slice %45 {offsets = [0, 0], sizes = [8, 241], strides = [1, 1]} : vector<8x256xf32> to vector<8x241xf32>
    %60 = tpu.concatenate %58, %59 in 1 : vector<8x15xf32>, vector<8x241xf32> -> vector<8x256xf32>
    %61 = vector.extract_strided_slice %9 {offsets = [2, 0], sizes = [1, 256], strides = [1, 1]} : vector<9x256xf32> to vector<1x256xf32>
    %62 = vector.broadcast %61 : vector<1x256xf32> to vector<8x256xf32>
    %63 = arith.mulf %60, %62 : vector<8x256xf32>
    %64 = vector.extract_strided_slice %45 {offsets = [0, 255], sizes = [8, 1], strides = [1, 1]} : vector<8x256xf32> to vector<8x1xf32>
    %65 = vector.extract_strided_slice %45 {offsets = [0, 0], sizes = [8, 255], strides = [1, 1]} : vector<8x256xf32> to vector<8x255xf32>
    %66 = tpu.concatenate %64, %65 in 1 : vector<8x1xf32>, vector<8x255xf32> -> vector<8x256xf32>
    %67 = vector.extract_strided_slice %9 {offsets = [3, 0], sizes = [1, 256], strides = [1, 1]} : vector<9x256xf32> to vector<1x256xf32>
    %68 = vector.broadcast %67 : vector<1x256xf32> to vector<8x256xf32>
    %69 = arith.mulf %66, %68 : vector<8x256xf32>
    %70 = vector.extract_strided_slice %45 {offsets = [0, 1], sizes = [8, 255], strides = [1, 1]} : vector<8x256xf32> to vector<8x255xf32>
    %71 = vector.extract_strided_slice %45 {offsets = [0, 0], sizes = [8, 1], strides = [1, 1]} : vector<8x256xf32> to vector<8x1xf32>
    %72 = tpu.concatenate %70, %71 in 1 : vector<8x255xf32>, vector<8x1xf32> -> vector<8x256xf32>
    %73 = vector.extract_strided_slice %9 {offsets = [5, 0], sizes = [1, 256], strides = [1, 1]} : vector<9x256xf32> to vector<1x256xf32>
    %74 = vector.broadcast %73 : vector<1x256xf32> to vector<8x256xf32>
    %75 = arith.mulf %72, %74 : vector<8x256xf32>
    %76 = vector.extract_strided_slice %45 {offsets = [0, 15], sizes = [8, 241], strides = [1, 1]} : vector<8x256xf32> to vector<8x241xf32>
    %77 = vector.extract_strided_slice %45 {offsets = [0, 0], sizes = [8, 15], strides = [1, 1]} : vector<8x256xf32> to vector<8x15xf32>
    %78 = tpu.concatenate %76, %77 in 1 : vector<8x241xf32>, vector<8x15xf32> -> vector<8x256xf32>
    %79 = vector.extract_strided_slice %9 {offsets = [6, 0], sizes = [1, 256], strides = [1, 1]} : vector<9x256xf32> to vector<1x256xf32>
    %80 = vector.broadcast %79 : vector<1x256xf32> to vector<8x256xf32>
    %81 = arith.mulf %78, %80 : vector<8x256xf32>
    %82 = vector.extract_strided_slice %45 {offsets = [0, 16], sizes = [8, 240], strides = [1, 1]} : vector<8x256xf32> to vector<8x240xf32>
    %83 = vector.extract_strided_slice %45 {offsets = [0, 0], sizes = [8, 16], strides = [1, 1]} : vector<8x256xf32> to vector<8x16xf32>
    %84 = tpu.concatenate %82, %83 in 1 : vector<8x240xf32>, vector<8x16xf32> -> vector<8x256xf32>
    %85 = vector.extract_strided_slice %9 {offsets = [7, 0], sizes = [1, 256], strides = [1, 1]} : vector<9x256xf32> to vector<1x256xf32>
    %86 = vector.broadcast %85 : vector<1x256xf32> to vector<8x256xf32>
    %87 = arith.mulf %84, %86 : vector<8x256xf32>
    %88 = vector.extract_strided_slice %45 {offsets = [0, 17], sizes = [8, 239], strides = [1, 1]} : vector<8x256xf32> to vector<8x239xf32>
    %89 = vector.extract_strided_slice %45 {offsets = [0, 0], sizes = [8, 17], strides = [1, 1]} : vector<8x256xf32> to vector<8x17xf32>
    %90 = tpu.concatenate %88, %89 in 1 : vector<8x239xf32>, vector<8x17xf32> -> vector<8x256xf32>
    %91 = vector.extract_strided_slice %9 {offsets = [8, 0], sizes = [1, 256], strides = [1, 1]} : vector<9x256xf32> to vector<1x256xf32>
    %92 = vector.broadcast %91 : vector<1x256xf32> to vector<8x256xf32>
    %93 = arith.mulf %90, %92 : vector<8x256xf32>
    %94 = tpu.concatenate %51, %57, %63, %69, %45, %75, %81, %87, %93 in 0 : vector<8x256xf32>, vector<8x256xf32>, vector<8x256xf32>, vector<8x256xf32>, vector<8x256xf32>, vector<8x256xf32>, vector<8x256xf32>, vector<8x256xf32>, vector<8x256xf32> -> vector<72x256xf32>
    %c0_33 = arith.constant 0 : index
    %c0_34 = arith.constant 0 : index
    %c0_35 = arith.constant 0 : index
    %95 = vector.load %arg7[%c0_33, %c0_34, %c0_35] : memref<1x8x72xf32, #tpu.memory_space<vmem>>, vector<1x8x72xf32>
    %96 = vector.shape_cast %95 : vector<1x8x72xf32> to vector<8x72xf32>
    %cst_36 = arith.constant dense<0.000000e+00> : vector<8x256xf32>
    %97 = tpu.matmul %96, %94, %cst_36 {dimension_numbers = #tpu.dot_dimension_numbers<[1], [0], [0], [1], [0, 0, 1, 1], [], []>} : vector<8x72xf32>, vector<72x256xf32>, vector<8x256xf32> -> vector<8x256xf32>
    %c0_37 = arith.constant 0 : index
    %c0_38 = arith.constant 0 : index
    %c0_39 = arith.constant 0 : index
    %98 = vector.load %arg8[%c0_37, %c0_38, %c0_39] : memref<1x8x1xf32, #tpu.memory_space<vmem>>, vector<1x8x1xf32>
    %99 = vector.shape_cast %98 : vector<1x8x1xf32> to vector<8x1xf32>
    %c0_40 = arith.constant 0 : index
    %c0_41 = arith.constant 0 : index
    %c0_42 = arith.constant 0 : index
    %100 = vector.load %arg9[%c0_40, %c0_41, %c0_42] : memref<1x8x1xf32, #tpu.memory_space<vmem>>, vector<1x8x1xf32>
    %101 = vector.shape_cast %100 : vector<1x8x1xf32> to vector<8x1xf32>
    %cst_43 = arith.constant dense<0.000000e+00> : vector<8xf32>
    %102 = vector.multi_reduction <add>, %97, %cst_43 [1] : vector<8x256xf32> to vector<8xf32>
    %103 = vector.shape_cast %102 : vector<8xf32> to vector<8x1xf32>
    %104 = arith.mulf %97, %97 : vector<8x256xf32>
    %cst_44 = arith.constant dense<0.000000e+00> : vector<8xf32>
    %105 = vector.multi_reduction <add>, %104, %cst_44 [1] : vector<8x256xf32> to vector<8xf32>
    %106 = vector.shape_cast %105 : vector<8xf32> to vector<8x1xf32>
    %cst_45 = arith.constant dense<0.000000e+00> : vector<4x1xf32>
    %107 = tpu.matmul %5, %103, %cst_45 {dimension_numbers = #tpu.dot_dimension_numbers<[1], [0], [0], [1], [0, 0, 1, 1], [], []>} : vector<4x8xf32>, vector<8x1xf32>, vector<4x1xf32> -> vector<4x1xf32>
    %cst_46 = arith.constant 5.120000e+02 : f32
    %108 = vector.broadcast %cst_46 : f32 to vector<4x1xf32>
    %109 = arith.divf %107, %108 : vector<4x1xf32>
    %cst_47 = arith.constant dense<0.000000e+00> : vector<4x1xf32>
    %110 = tpu.matmul %5, %106, %cst_47 {dimension_numbers = #tpu.dot_dimension_numbers<[1], [0], [0], [1], [0, 0, 1, 1], [], []>} : vector<4x8xf32>, vector<8x1xf32>, vector<4x1xf32> -> vector<4x1xf32>
    %cst_48 = arith.constant 5.120000e+02 : f32
    %111 = vector.broadcast %cst_48 : f32 to vector<4x1xf32>
    %112 = arith.divf %110, %111 : vector<4x1xf32>
    %113 = arith.mulf %109, %109 : vector<4x1xf32>
    %114 = arith.subf %112, %113 : vector<4x1xf32>
    %cst_49 = arith.constant 0.000000e+00 : f32
    %115 = vector.broadcast %cst_49 : f32 to vector<4x1xf32>
    %116 = arith.maximumf %114, %115 : vector<4x1xf32>
    %cst_50 = arith.constant 9.99999974E-6 : f32
    %117 = vector.broadcast %cst_50 : f32 to vector<4x1xf32>
    %118 = arith.addf %116, %117 : vector<4x1xf32>
    %119 = math.rsqrt %118 : vector<4x1xf32>
    %cst_51 = arith.constant dense<0.000000e+00> : vector<8x1xf32>
    %120 = tpu.matmul %6, %109, %cst_51 {dimension_numbers = #tpu.dot_dimension_numbers<[1], [0], [0], [1], [0, 0, 1, 1], [], []>} : vector<8x4xf32>, vector<4x1xf32>, vector<8x1xf32> -> vector<8x1xf32>
    %cst_52 = arith.constant dense<0.000000e+00> : vector<8x1xf32>
    %121 = tpu.matmul %6, %119, %cst_52 {dimension_numbers = #tpu.dot_dimension_numbers<[1], [0], [0], [1], [0, 0, 1, 1], [], []>} : vector<8x4xf32>, vector<4x1xf32>, vector<8x1xf32> -> vector<8x1xf32>
    %122 = arith.mulf %121, %99 : vector<8x1xf32>
    %123 = arith.mulf %120, %122 : vector<8x1xf32>
    %124 = arith.subf %101, %123 : vector<8x1xf32>
    %125 = vector.broadcast %122 : vector<8x1xf32> to vector<8x256xf32>
    %126 = arith.mulf %97, %125 : vector<8x256xf32>
    %127 = vector.broadcast %124 : vector<8x1xf32> to vector<8x256xf32>
    %128 = arith.addf %126, %127 : vector<8x256xf32>
    %cst_53 = arith.constant 0.000000e+00 : f32
    %129 = vector.broadcast %cst_53 : f32 to vector<8x256xf32>
    %130 = arith.maximumf %128, %129 : vector<8x256xf32>
    %c0_54 = arith.constant 0 : index
    %c0_55 = arith.constant 0 : index
    %c0_56 = arith.constant 0 : index
    %131 = vector.load %arg10[%c0_54, %c0_55, %c0_56] : memref<1x32x8xf32, #tpu.memory_space<vmem>>, vector<1x32x8xf32>
    %132 = vector.shape_cast %131 : vector<1x32x8xf32> to vector<32x8xf32>
    %cst_57 = arith.constant dense<0.000000e+00> : vector<32x256xf32>
    %133 = tpu.matmul %132, %130, %cst_57 {dimension_numbers = #tpu.dot_dimension_numbers<[1], [0], [0], [1], [0, 0, 1, 1], [], []>} : vector<32x8xf32>, vector<8x256xf32>, vector<32x256xf32> -> vector<32x256xf32>
    %c0_58 = arith.constant 0 : index
    %c0_59 = arith.constant 0 : index
    %c0_60 = arith.constant 0 : index
    %134 = vector.load %arg11[%c0_58, %c0_59, %c0_60] : memref<1x32x1xf32, #tpu.memory_space<vmem>>, vector<1x32x1xf32>
    %135 = vector.shape_cast %134 : vector<1x32x1xf32> to vector<32x1xf32>
    %c0_61 = arith.constant 0 : index
    %c0_62 = arith.constant 0 : index
    %c0_63 = arith.constant 0 : index
    %136 = vector.load %arg12[%c0_61, %c0_62, %c0_63] : memref<1x32x1xf32, #tpu.memory_space<vmem>>, vector<1x32x1xf32>
    %137 = vector.shape_cast %136 : vector<1x32x1xf32> to vector<32x1xf32>
    %cst_64 = arith.constant dense<0.000000e+00> : vector<32xf32>
    %138 = vector.multi_reduction <add>, %133, %cst_64 [1] : vector<32x256xf32> to vector<32xf32>
    %139 = vector.shape_cast %138 : vector<32xf32> to vector<32x1xf32>
    %140 = arith.mulf %133, %133 : vector<32x256xf32>
    %cst_65 = arith.constant dense<0.000000e+00> : vector<32xf32>
    %141 = vector.multi_reduction <add>, %140, %cst_65 [1] : vector<32x256xf32> to vector<32xf32>
    %142 = vector.shape_cast %141 : vector<32xf32> to vector<32x1xf32>
    %cst_66 = arith.constant dense<0.000000e+00> : vector<4x1xf32>
    %143 = tpu.matmul %7, %139, %cst_66 {dimension_numbers = #tpu.dot_dimension_numbers<[1], [0], [0], [1], [0, 0, 1, 1], [], []>} : vector<4x32xf32>, vector<32x1xf32>, vector<4x1xf32> -> vector<4x1xf32>
    %cst_67 = arith.constant 2.048000e+03 : f32
    %144 = vector.broadcast %cst_67 : f32 to vector<4x1xf32>
    %145 = arith.divf %143, %144 : vector<4x1xf32>
    %cst_68 = arith.constant dense<0.000000e+00> : vector<4x1xf32>
    %146 = tpu.matmul %7, %142, %cst_68 {dimension_numbers = #tpu.dot_dimension_numbers<[1], [0], [0], [1], [0, 0, 1, 1], [], []>} : vector<4x32xf32>, vector<32x1xf32>, vector<4x1xf32> -> vector<4x1xf32>
    %cst_69 = arith.constant 2.048000e+03 : f32
    %147 = vector.broadcast %cst_69 : f32 to vector<4x1xf32>
    %148 = arith.divf %146, %147 : vector<4x1xf32>
    %149 = arith.mulf %145, %145 : vector<4x1xf32>
    %150 = arith.subf %148, %149 : vector<4x1xf32>
    %cst_70 = arith.constant 0.000000e+00 : f32
    %151 = vector.broadcast %cst_70 : f32 to vector<4x1xf32>
    %152 = arith.maximumf %150, %151 : vector<4x1xf32>
    %cst_71 = arith.constant 9.99999974E-6 : f32
    %153 = vector.broadcast %cst_71 : f32 to vector<4x1xf32>
    %154 = arith.addf %152, %153 : vector<4x1xf32>
    %155 = math.rsqrt %154 : vector<4x1xf32>
    %cst_72 = arith.constant dense<0.000000e+00> : vector<32x1xf32>
    %156 = tpu.matmul %8, %145, %cst_72 {dimension_numbers = #tpu.dot_dimension_numbers<[1], [0], [0], [1], [0, 0, 1, 1], [], []>} : vector<32x4xf32>, vector<4x1xf32>, vector<32x1xf32> -> vector<32x1xf32>
    %cst_73 = arith.constant dense<0.000000e+00> : vector<32x1xf32>
    %157 = tpu.matmul %8, %155, %cst_73 {dimension_numbers = #tpu.dot_dimension_numbers<[1], [0], [0], [1], [0, 0, 1, 1], [], []>} : vector<32x4xf32>, vector<4x1xf32>, vector<32x1xf32> -> vector<32x1xf32>
    %158 = arith.mulf %157, %135 : vector<32x1xf32>
    %159 = arith.mulf %156, %158 : vector<32x1xf32>
    %160 = arith.subf %137, %159 : vector<32x1xf32>
    %161 = vector.broadcast %158 : vector<32x1xf32> to vector<32x256xf32>
    %162 = arith.mulf %133, %161 : vector<32x256xf32>
    %163 = vector.broadcast %160 : vector<32x1xf32> to vector<32x256xf32>
    %164 = arith.addf %162, %163 : vector<32x256xf32>
    %c0_74 = arith.constant 0 : index
    %c0_75 = arith.constant 0 : index
    %c0_76 = arith.constant 0 : index
    %165 = vector.load %arg13[%c0_74, %c0_75, %c0_76] : memref<1x32x32xf32, #tpu.memory_space<vmem>>, vector<1x32x32xf32>
    %166 = vector.shape_cast %165 : vector<1x32x32xf32> to vector<32x32xf32>
    %cst_77 = arith.constant dense<0.000000e+00> : vector<32x256xf32>
    %167 = tpu.matmul %166, %4, %cst_77 {dimension_numbers = #tpu.dot_dimension_numbers<[1], [0], [0], [1], [0, 0, 1, 1], [], []>} : vector<32x32xf32>, vector<32x256xf32>, vector<32x256xf32> -> vector<32x256xf32>
    %c0_78 = arith.constant 0 : index
    %c0_79 = arith.constant 0 : index
    %c0_80 = arith.constant 0 : index
    %168 = vector.load %arg14[%c0_78, %c0_79, %c0_80] : memref<1x32x1xf32, #tpu.memory_space<vmem>>, vector<1x32x1xf32>
    %169 = vector.shape_cast %168 : vector<1x32x1xf32> to vector<32x1xf32>
    %c0_81 = arith.constant 0 : index
    %c0_82 = arith.constant 0 : index
    %c0_83 = arith.constant 0 : index
    %170 = vector.load %arg15[%c0_81, %c0_82, %c0_83] : memref<1x32x1xf32, #tpu.memory_space<vmem>>, vector<1x32x1xf32>
    %171 = vector.shape_cast %170 : vector<1x32x1xf32> to vector<32x1xf32>
    %cst_84 = arith.constant dense<0.000000e+00> : vector<32xf32>
    %172 = vector.multi_reduction <add>, %167, %cst_84 [1] : vector<32x256xf32> to vector<32xf32>
    %173 = vector.shape_cast %172 : vector<32xf32> to vector<32x1xf32>
    %174 = arith.mulf %167, %167 : vector<32x256xf32>
    %cst_85 = arith.constant dense<0.000000e+00> : vector<32xf32>
    %175 = vector.multi_reduction <add>, %174, %cst_85 [1] : vector<32x256xf32> to vector<32xf32>
    %176 = vector.shape_cast %175 : vector<32xf32> to vector<32x1xf32>
    %cst_86 = arith.constant dense<0.000000e+00> : vector<4x1xf32>
    %177 = tpu.matmul %7, %173, %cst_86 {dimension_numbers = #tpu.dot_dimension_numbers<[1], [0], [0], [1], [0, 0, 1, 1], [], []>} : vector<4x32xf32>, vector<32x1xf32>, vector<4x1xf32> -> vector<4x1xf32>
    %cst_87 = arith.constant 2.048000e+03 : f32
    %178 = vector.broadcast %cst_87 : f32 to vector<4x1xf32>
    %179 = arith.divf %177, %178 : vector<4x1xf32>
    %cst_88 = arith.constant dense<0.000000e+00> : vector<4x1xf32>
    %180 = tpu.matmul %7, %176, %cst_88 {dimension_numbers = #tpu.dot_dimension_numbers<[1], [0], [0], [1], [0, 0, 1, 1], [], []>} : vector<4x32xf32>, vector<32x1xf32>, vector<4x1xf32> -> vector<4x1xf32>
    %cst_89 = arith.constant 2.048000e+03 : f32
    %181 = vector.broadcast %cst_89 : f32 to vector<4x1xf32>
    %182 = arith.divf %180, %181 : vector<4x1xf32>
    %183 = arith.mulf %179, %179 : vector<4x1xf32>
    %184 = arith.subf %182, %183 : vector<4x1xf32>
    %cst_90 = arith.constant 0.000000e+00 : f32
    %185 = vector.broadcast %cst_90 : f32 to vector<4x1xf32>
    %186 = arith.maximumf %184, %185 : vector<4x1xf32>
    %cst_91 = arith.constant 9.99999974E-6 : f32
    %187 = vector.broadcast %cst_91 : f32 to vector<4x1xf32>
    %188 = arith.addf %186, %187 : vector<4x1xf32>
    %189 = math.rsqrt %188 : vector<4x1xf32>
    %cst_92 = arith.constant dense<0.000000e+00> : vector<32x1xf32>
    %190 = tpu.matmul %8, %179, %cst_92 {dimension_numbers = #tpu.dot_dimension_numbers<[1], [0], [0], [1], [0, 0, 1, 1], [], []>} : vector<32x4xf32>, vector<4x1xf32>, vector<32x1xf32> -> vector<32x1xf32>
    %cst_93 = arith.constant dense<0.000000e+00> : vector<32x1xf32>
    %191 = tpu.matmul %8, %189, %cst_93 {dimension_numbers = #tpu.dot_dimension_numbers<[1], [0], [0], [1], [0, 0, 1, 1], [], []>} : vector<32x4xf32>, vector<4x1xf32>, vector<32x1xf32> -> vector<32x1xf32>
    %192 = arith.mulf %191, %169 : vector<32x1xf32>
    %193 = arith.mulf %190, %192 : vector<32x1xf32>
    %194 = arith.subf %171, %193 : vector<32x1xf32>
    %195 = vector.broadcast %192 : vector<32x1xf32> to vector<32x256xf32>
    %196 = arith.mulf %167, %195 : vector<32x256xf32>
    %197 = vector.broadcast %194 : vector<32x1xf32> to vector<32x256xf32>
    %198 = arith.addf %196, %197 : vector<32x256xf32>
    %c0_94 = arith.constant 0 : index
    %c0_95 = arith.constant 0 : index
    %c0_96 = arith.constant 0 : index
    %199 = vector.load %arg21[%c0_94, %c0_95, %c0_96] : memref<1x32x256xf32, #tpu.memory_space<vmem>>, vector<1x32x256xf32>
    %200 = vector.shape_cast %199 : vector<1x32x256xf32> to vector<32x256xf32>
    %201 = arith.addf %164, %198 : vector<32x256xf32>
    %cst_97 = arith.constant 0.000000e+00 : f32
    %202 = vector.broadcast %cst_97 : f32 to vector<32x256xf32>
    %203 = arith.maximumf %201, %202 : vector<32x256xf32>
    %204 = arith.addf %200, %203 : vector<32x256xf32>
    %c0_98 = arith.constant 0 : index
    %c0_99 = arith.constant 0 : index
    %c0_100 = arith.constant 0 : index
    %205 = vector.load %arg21[%c0_98, %c0_99, %c0_100] : memref<1x32x256xf32, #tpu.memory_space<vmem>>, vector<1x32x256xf32>
    %206 = vector.shape_cast %205 : vector<1x32x256xf32> to vector<32x256xf32>
    %207 = vector.shape_cast %204 : vector<32x256xf32> to vector<1x32x256xf32>
    tpu.vector_store %arg21[%c0_98, %c0_99, %c0_100], %207 {strides = array<i32>} : memref<1x32x256xf32, #tpu.memory_space<vmem>>, vector<1x32x256xf32>,
    return
  }
  func.func @transform_0(%arg0: i32, %arg1: i32, %arg2: memref<2xi32, #tpu.memory_space<smem>>) -> (i32, i32, i32) {
    %c0_i32 = arith.constant 0 : i32
    %c0_i32_0 = arith.constant 0 : i32
    return %arg0, %arg1, %c0_i32 : i32, i32, i32
  }
  func.func @transform_1(%arg0: i32, %arg1: i32, %arg2: memref<2xi32, #tpu.memory_space<smem>>) -> (i32, i32, i32) {
    %0 = arith.index_cast %arg1 : i32 to index
    %1 = memref.load %arg2[%0] : memref<2xi32, #tpu.memory_space<smem>>
    %c0_i32 = arith.constant 0 : i32
    %c0_i32_0 = arith.constant 0 : i32
    %c0_i32_1 = arith.constant 0 : i32
    return %1, %c0_i32, %c0_i32_0 : i32, i32, i32
  }
  func.func @transform_2(%arg0: i32, %arg1: i32, %arg2: memref<2xi32, #tpu.memory_space<smem>>) -> (i32, i32, i32) {
    %0 = arith.index_cast %arg1 : i32 to index
    %1 = memref.load %arg2[%0] : memref<2xi32, #tpu.memory_space<smem>>
    %c0_i32 = arith.constant 0 : i32
    %c0_i32_0 = arith.constant 0 : i32
    %c0_i32_1 = arith.constant 0 : i32
    return %1, %c0_i32, %c0_i32_0 : i32, i32, i32
  }
  func.func @transform_3(%arg0: i32, %arg1: i32, %arg2: memref<2xi32, #tpu.memory_space<smem>>) -> (i32, i32, i32) {
    %0 = arith.index_cast %arg1 : i32 to index
    %1 = memref.load %arg2[%0] : memref<2xi32, #tpu.memory_space<smem>>
    %c0_i32 = arith.constant 0 : i32
    %c0_i32_0 = arith.constant 0 : i32
    %c0_i32_1 = arith.constant 0 : i32
    return %1, %c0_i32, %c0_i32_0 : i32, i32, i32
  }
  func.func @transform_4(%arg0: i32, %arg1: i32, %arg2: memref<2xi32, #tpu.memory_space<smem>>) -> (i32, i32, i32) {
    %0 = arith.index_cast %arg1 : i32 to index
    %1 = memref.load %arg2[%0] : memref<2xi32, #tpu.memory_space<smem>>
    %c0_i32 = arith.constant 0 : i32
    %c0_i32_0 = arith.constant 0 : i32
    %c0_i32_1 = arith.constant 0 : i32
    return %1, %c0_i32, %c0_i32_0 : i32, i32, i32
  }
  func.func @transform_5(%arg0: i32, %arg1: i32, %arg2: memref<2xi32, #tpu.memory_space<smem>>) -> (i32, i32, i32) {
    %0 = arith.index_cast %arg1 : i32 to index
    %1 = memref.load %arg2[%0] : memref<2xi32, #tpu.memory_space<smem>>
    %c0_i32 = arith.constant 0 : i32
    %c0_i32_0 = arith.constant 0 : i32
    %c0_i32_1 = arith.constant 0 : i32
    return %1, %c0_i32, %c0_i32_0 : i32, i32, i32
  }
  func.func @transform_6(%arg0: i32, %arg1: i32, %arg2: memref<2xi32, #tpu.memory_space<smem>>) -> (i32, i32, i32) {
    %0 = arith.index_cast %arg1 : i32 to index
    %1 = memref.load %arg2[%0] : memref<2xi32, #tpu.memory_space<smem>>
    %c0_i32 = arith.constant 0 : i32
    %c0_i32_0 = arith.constant 0 : i32
    %c0_i32_1 = arith.constant 0 : i32
    return %1, %c0_i32, %c0_i32_0 : i32, i32, i32
  }
  func.func @transform_7(%arg0: i32, %arg1: i32, %arg2: memref<2xi32, #tpu.memory_space<smem>>) -> (i32, i32, i32) {
    %0 = arith.index_cast %arg1 : i32 to index
    %1 = memref.load %arg2[%0] : memref<2xi32, #tpu.memory_space<smem>>
    %c0_i32 = arith.constant 0 : i32
    %c0_i32_0 = arith.constant 0 : i32
    %c0_i32_1 = arith.constant 0 : i32
    return %1, %c0_i32, %c0_i32_0 : i32, i32, i32
  }
  func.func @transform_8(%arg0: i32, %arg1: i32, %arg2: memref<2xi32, #tpu.memory_space<smem>>) -> (i32, i32, i32) {
    %c0_i32 = arith.constant 0 : i32
    %c0_i32_0 = arith.constant 0 : i32
    %c0_i32_1 = arith.constant 0 : i32
    return %arg1, %c0_i32, %c0_i32_0 : i32, i32, i32
  }
  func.func @transform_9(%arg0: i32, %arg1: i32, %arg2: memref<2xi32, #tpu.memory_space<smem>>) -> (i32, i32, i32) {
    %c0_i32 = arith.constant 0 : i32
    %c0_i32_0 = arith.constant 0 : i32
    %c0_i32_1 = arith.constant 0 : i32
    return %arg1, %c0_i32, %c0_i32_0 : i32, i32, i32
  }
  func.func @transform_10(%arg0: i32, %arg1: i32, %arg2: memref<2xi32, #tpu.memory_space<smem>>) -> (i32, i32, i32) {
    %0 = arith.index_cast %arg1 : i32 to index
    %1 = memref.load %arg2[%0] : memref<2xi32, #tpu.memory_space<smem>>
    %c0_i32 = arith.constant 0 : i32
    %c0_i32_0 = arith.constant 0 : i32
    %c0_i32_1 = arith.constant 0 : i32
    return %1, %c0_i32, %c0_i32_0 : i32, i32, i32
  }
  func.func @transform_11(%arg0: i32, %arg1: i32, %arg2: memref<2xi32, #tpu.memory_space<smem>>) -> (i32, i32, i32) {
    %c0_i32 = arith.constant 0 : i32
    %c0_i32_0 = arith.constant 0 : i32
    %c0_i32_1 = arith.constant 0 : i32
    return %arg1, %c0_i32, %c0_i32_0 : i32, i32, i32
  }
  func.func @transform_12(%arg0: i32, %arg1: i32, %arg2: memref<2xi32, #tpu.memory_space<smem>>) -> (i32, i32, i32) {
    %c0_i32 = arith.constant 0 : i32
    %c0_i32_0 = arith.constant 0 : i32
    %c0_i32_1 = arith.constant 0 : i32
    return %arg1, %c0_i32, %c0_i32_0 : i32, i32, i32
  }
  func.func @transform_13(%arg0: i32, %arg1: i32, %arg2: memref<2xi32, #tpu.memory_space<smem>>) -> (i32, i32) {
    %c0_i32 = arith.constant 0 : i32
    %c0_i32_0 = arith.constant 0 : i32
    %c0_i32_1 = arith.constant 0 : i32
    return %c0_i32, %c0_i32_0 : i32, i32
  }
  func.func @transform_14(%arg0: i32, %arg1: i32, %arg2: memref<2xi32, #tpu.memory_space<smem>>) -> (i32, i32) {
    %c0_i32 = arith.constant 0 : i32
    %c0_i32_0 = arith.constant 0 : i32
    %c0_i32_1 = arith.constant 0 : i32
    return %c0_i32, %c0_i32_0 : i32, i32
  }
  func.func @transform_15(%arg0: i32, %arg1: i32, %arg2: memref<2xi32, #tpu.memory_space<smem>>) -> (i32, i32) {
    %c0_i32 = arith.constant 0 : i32
    %c0_i32_0 = arith.constant 0 : i32
    %c0_i32_1 = arith.constant 0 : i32
    return %c0_i32, %c0_i32_0 : i32, i32
  }
  func.func @transform_16(%arg0: i32, %arg1: i32, %arg2: memref<2xi32, #tpu.memory_space<smem>>) -> (i32, i32) {
    %c0_i32 = arith.constant 0 : i32
    %c0_i32_0 = arith.constant 0 : i32
    %c0_i32_1 = arith.constant 0 : i32
    return %c0_i32, %c0_i32_0 : i32, i32
  }
  func.func @transform_17(%arg0: i32, %arg1: i32, %arg2: memref<2xi32, #tpu.memory_space<smem>>) -> (i32, i32) {
    %c0_i32 = arith.constant 0 : i32
    %c0_i32_0 = arith.constant 0 : i32
    %c0_i32_1 = arith.constant 0 : i32
    return %c0_i32, %c0_i32_0 : i32, i32
  }
  func.func @transform_18(%arg0: i32, %arg1: i32, %arg2: memref<2xi32, #tpu.memory_space<smem>>) -> (i32, i32, i32) {
    %c0_i32 = arith.constant 0 : i32
    %c0_i32_0 = arith.constant 0 : i32
    %c0_i32_1 = arith.constant 0 : i32
    return %arg0, %c0_i32, %c0_i32_0 : i32, i32, i32
  }
}

</mosaic_0001>

<bundles_post_ra>
// kernel: aggregation_network_forward.1
= control target key start
LH: loop header
LB: loop body
LE: loop exit
PB: predicated region body
PF: predicated region fallthrough
CT: control target
= control target key end

     0   :  { %s2511_s21 = smov [#allocation3]   ;;  %s3147_s0 = inlined_call_operand.vmem [shape: s32[2], index: 0, kind: input, shape index: {}]   ;;  %s3148_s1 = inlined_call_operand.vmem [shape: f32[2,64,256], index: 1, kind: input, shape index: {}]   ;;  %s3149_s2 = inlined_call_operand.vmem [shape: f32[2,8,32], index: 2, kind: input, shape index: {}]   ;;  %s3150_s3 = inlined_call_operand.vmem [shape: f32[2,8,1], index: 3, kind: input, shape index: {}]   ;;  %s3151_s4 = inlined_call_operand.vmem [shape: f32[2,8,1], index: 4, kind: input, shape index: {}]   ;;  %s3152_s5 = inlined_call_operand.vmem [shape: f32[2,8,72], index: 5, kind: input, shape index: {}]   ;;  %s3153_s6 = inlined_call_operand.vmem [shape: f32[2,8,1], index: 6, kind: input, shape index: {}]   ;;  %s3154_s7 = inlined_call_operand.vmem [shape: f32[2,8,1], index: 7, kind: input, shape index: {}]   ;;  %s3155_s8 = inlined_call_operand.vmem [shape: f32[2,32,8], index: 8, kind: input, shape index: {}]   ;;  %s3156_s9 = inlined_call_operand.vmem [shape: f32[2,32,1], index: 9, kind: input, shape index: {}]   ;;  %s3157_s10 = inlined_call_operand.vmem [shape: f32[2,32,1], index: 10, kind: input, shape index: {}]   ;;  %s3158_s11 = inlined_call_operand.vmem [shape: f32[2,32,32], index: 11, kind: input, shape index: {}]   ;;  %s3159_s12 = inlined_call_operand.vmem [shape: f32[2,32,1], index: 12, kind: input, shape index: {}]   ;;  %s3160_s13 = inlined_call_operand.vmem [shape: f32[2,32,1], index: 13, kind: input, shape index: {}]   ;;  %s3161_s14 = inlined_call_operand.vmem [shape: f32[4,8], index: 14, kind: input, shape index: {}]   ;;  %s3162_s15 = inlined_call_operand.vmem [shape: f32[8,4], index: 15, kind: input, shape index: {}]   ;;  %s3163_s16 = inlined_call_operand.vmem [shape: f32[4,32], index: 16, kind: input, shape index: {}]   ;;  %s3164_s17 = inlined_call_operand.vmem [shape: f32[32,4], index: 17, kind: input, shape index: {}]   ;;  %s3165_s18 = inlined_call_operand.vmem [shape: f32[9,256], index: 18, kind: input, shape index: {}]   ;;  %s3166_s19 = inlined_call_operand.vmem [shape: f32[2,32,256], index: 19, kind: output, shape index: {}]  }
   0x1   :  { %3172 = sst [smem:[#allocation12_spill]] %s3147_s0 }
   0x2   :  { %3173 = sst [smem:[#allocation13_spill]] %s3148_s1 }
   0x3   :  { %3174 = sst [smem:[#allocation14_spill]] %s3149_s2 }
   0x4   :  { %3175 = sst [smem:[#allocation15_spill]] %s3150_s3 }
   0x5   :  { %3176 = sst [smem:[#allocation16_spill]] %s3151_s4 }
   0x6   :  { %3177 = sst [smem:[#allocation17_spill]] %s3152_s5 }
   0x7   :  { %3178 = sst [smem:[#allocation18_spill]] %s3153_s6 }
   0x8   :  { %3179 = sst [smem:[#allocation19_spill]] %s3154_s7 }
   0x9   :  { %3180 = sst [smem:[#allocation20_spill]] %s3156_s9 }
   0xa   :  { %3181 = sst [smem:[#allocation21_spill]] %s3157_s10 }
   0xb   :  { %3182 = sst [smem:[#allocation22_spill]] %s3158_s11 }
   0xc   :  { %3183 = sst [smem:[#allocation23_spill]] %s3161_s14 }
   0xd   :  { %3184 = sst [smem:[#allocation24_spill]] %s3162_s15 }
   0xe   :  { %3185 = sst [smem:[#allocation25_spill]] %s3163_s16 }
   0xf   :  { %3186 = sst [smem:[#allocation26_spill]] %s3164_s17 }
  0x10   :  { %3187 = sst [smem:[#allocation27_spill]] %s3165_s18 }
  0x11   :  { %s3188_s20 = sld [smem:[#allocation12_spill]] }
  0x17   :  { %s25_s11 = sshll.u32 %s3188_s20, 4  ;;  %s26_s11 = int_to_ptr.vmem [resolvable:$true] %s25_s11 }
  0x18   :  { %28 = dma.vmem_to_smem %s26_s11, 16, %s2511_s21, [#allocation2] }
  0x19   :  { %2489 = dma.done.wait [#allocation2], 16 }
  0x1a   :  { %2490 = vsyncadd [#allocation2], 4294967280 }
  0x1b   :  { %31 = sfence }
  0x1c   :  { %s2627_s1 = smov 0   ;;  %s2629_s22 = smov 0  }
  0x1d   :  { %s2631_s2 = smov 0   ;;  %s2633_s23 = smov 0  }
  0x1e   :  { %s2635_s24 = smov 0  }
  0x1f LB: > { %3189 = sst [smem:[#allocation5_spill]] %s2501_s2  ;;  %s46_s11 = sadd.s32 1, %s2501_s2  ;;  %s2509_s24 = sphi %s2635_s24, %s37_s24   ;;  %s2505_s23 = sphi %s2633_s23, %s3217_s23   ;;  %s2501_s2 = sphi %s2631_s2, %s3216_s2   ;;  %s2497_s22 = sphi %s2629_s22, %s3215_s22   ;;  %s2493_s1 = sphi %s2627_s1, %s3214_s1  }
  0x20   : > { %3190 = sst [smem:[#allocation6_spill]] %s2505_s23  ;;  %s49_s25 = sadd.s32 1, %s2505_s23 }
  0x21   : > { %3191 = sst [smem:[#allocation7_spill]] %s2509_s24  ;;  %p47_p0 = scmp.ge.s32.totalorder %s46_s11, 2 }
  0x22   : > { %p2296_p1 = scmp.ge.s32.totalorder %s2509_s24, 1  ;;  %p687_p2 = scmp.lt.s32.totalorder %s2509_s24, 5 }
  0x23   : > { %s3219_s11 = smov (%p47_p0, %s46_s11), 0  ;;  %s3221_s25 = smov (!%p47_p0, %s49_s25), %s2505_s23 }
  0x24   : > { %3192 = sst [smem:[#allocation8_spill]] %s3219_s11  ;;  %p688_p3 = pnand %p2296_p1, %p687_p2 }
  0x25   : > { %p51_p4 = scmp.ge.s32.totalorder %s3221_s25, 2 }
  0x26   : > { %691 = sbr.rel (%p688_p3) target bundleno = 2516 (0x9d4), region = 92 }
  0x27   : > { %s3223_s25 = smov (%p51_p4, %s3221_s25), 0 }
  0x28   : > { %3193 = sst [smem:[#allocation9_spill]] %s3223_s25 }
  0x2b   : > { %s2297_s3 = sshll.u32 %s2493_s1, 2  ;;  %p809_p5 = scmp.lt.s32.totalorder %s2497_s22, 1 }
  0x2c   : > { %p811_p6 = scmp.lt.s32.totalorder %s2297_s3, 7  ;;  %s819_s26 = sld [smem:[#allocation3 + %s2493_s1]] }
  0x2d   : > { %s3225_s22 = smov (!%p809_p5, %s2497_s22), 1  ;;  %s825_s28 = sld [smem:[#allocation3 + %s2493_s1]] }
  0x2e   : > { %s3227_s3 = smov (!%p811_p6, %s2297_s3), 7  ;;  %s2299_s27 = sshll.u32 %s3225_s22, 4 }
  0x2f   : > { %s2298_s29 = sshll.u32 %s3227_s3, 1  ;;  %s831_s0 = sld [smem:[#allocation3 + %s2493_s1]] }
  0x30   : > { %s815_s30 = sadd.s32 %s2299_s27, %s2298_s29  ;;  %s837_s20 = sld [smem:[#allocation3 + %s2493_s1]] }
  0x31   : > { %s2300_s21 = sshll.u32 %s815_s30, 3  ;;  %s3194_s23 = sld [smem:[#allocation13_spill]] }
  0x32   : > { %p820_p7 = scmp.lt.s32.totalorder %s819_s26, 1  ;;  %s843_s24 = sld [smem:[#allocation3 + %s2493_s1]] }
  0x33   : > { %p826_p8 = scmp.lt.s32.totalorder %s825_s28, 1  ;;  %s849_s17 = sld [smem:[#allocation3 + %s2493_s1]] }
  0x34   : > { %s3229_s26 = smov (!%p820_p7, %s819_s26), 1  ;;  %s3195_s3 = sld [smem:[#allocation14_spill]] }
  0x35   : > { %s2301_s16 = sshll.u32 %s3229_s26, 3  ;;  %p832_p9 = scmp.lt.s32.totalorder %s831_s0, 1 }
  0x36   : > { %p838_p10 = scmp.lt.s32.totalorder %s837_s20, 1  ;;  %s3231_s28 = smov (!%p826_p8, %s825_s28), 1 }
  0x37   : > { %s2670_s2 = scalar_lea.vmem %s3194_s23, %s2300_s21  ;;  %s3233_s0 = smov (!%p832_p9, %s831_s0), 1 }
  0x38   : > { %s2302_s11 = sshll.u32 %s3231_s28, 3  ;;  %p844_p11 = scmp.lt.s32.totalorder %s843_s24, 1 }
  0x39   : > { %s3197_s27 = sld [smem:[#allocation15_spill]]  ;;  %s2303_s26 = sshll.u32 %s3233_s0, 3 }
  0x3a   : > { %s2677_s14 = scalar_lea.vmem %s3195_s3, %s2301_s16  ;;  %s3198_s4 = sld [smem:[#allocation16_spill]] }
  0x3b   : > { %3196 = sst [smem:[#allocation10_spill]] %s2677_s14  ;;  %p850_p12 = scmp.lt.s32.totalorder %s849_s17, 1 }
  0x3c   : > { %s3235_s20 = smov (!%p838_p10, %s837_s20), 1  ;;  %s3237_s24 = smov (!%p844_p11, %s843_s24), 1 }
  0x3d   : > { %s2304_s16 = sshll.u32 %s3235_s20, 3  ;;  %s855_s18 = sld [smem:[#allocation3 + %s2493_s1]] }
  0x3e   : > { %s3199_s5 = sld [smem:[#allocation17_spill]]  ;;  %s2305_s23 = sshll.u32 %s3237_s24, 3 }
  0x3f   : > { %s2682_s29 = scalar_lea.vmem %s3197_s27, %s2302_s11  ;;  %s3200_s6 = sld [smem:[#allocation18_spill]] }
  0x40   : > { %s2687_s15 = scalar_lea.vmem %s3198_s4, %s2303_s26  ;;  %p862_p13 = scmp.lt.s32.totalorder %s2493_s1, 1 }
  0x41   : > { %s3239_s17 = smov (!%p850_p12, %s849_s17), 1  ;;  %s872_s30 = sld [smem:[#allocation3 + %s2493_s1]] }
  0x42   : > { %s863_s27 = scalar_select %p862_p13, %s2493_s1, 1 }
  0x43   : > { %s2306_s26 = sshll.u32 %s3239_s17, 3  ;;  %s3202_s7 = sld [smem:[#allocation19_spill]] }
  0x44   : > { %s2693_s14 = scalar_lea.vmem %s3199_s5, %s2304_s16  ;;  %p856_p0 = scmp.lt.s32.totalorder %s855_s18, 1 }
  0x45   : > { %s2698_s0 = scalar_lea.vmem %s3200_s6, %s2305_s23  ;;  %s2381_s28 = sshll.u32 %s863_s27, 5 }
  0x46   : > { %3201 = sst [smem:[#allocation11_spill]] %s2698_s0  ;;  %s2386_s16 = sshll.u32 %s3225_s22, 6 }
  0x47   : > { %s3241_s18 = smov (!%p856_p0, %s855_s18), 1  ;;  %s3203_s9 = sld [smem:[#allocation20_spill]] }
  0x48   : > { %s3204_s10 = sld [smem:[#allocation21_spill]]  ;;  %s2380_s17 = sshll.u32 %s3241_s18, 5 }
  0x49   : > { %s2706_s20 = scalar_lea.vmem %s3202_s7, %s2306_s26  ;;  %s2722_s4 = scalar_lea.vmem %s3159_s12, %s2381_s28 }
  0x4a   : > { %s2727_s22 = scalar_lea.vmem %s3155_s8, %s2380_s17  ;;  %p873_p1 = scmp.lt.s32.totalorder %s872_s30, 1 }
  0x4b   : > { %s2732_s3 = scalar_lea.vmem %s3160_s13, %s2381_s28  ;;  %s2737_s18 = scalar_lea.vmem %s3166_s19, %s2386_s16 }
  0x4c   : > { %s3243_s30 = smov (!%p873_p1, %s872_s30), 1  ;;  %p2321_p2 = scmp.ne.s32.totalorder %s2493_s1, 0 }
  0x4d   : > { %s2712_s11 = scalar_lea.vmem %s3203_s9, %s2381_s28  ;;  %s2383_s6 = sshll.u32 %s3243_s30, 5 }
  0x4e   : > { %s2717_s5 = scalar_lea.vmem %s3204_s10, %s2381_s28  ;;  %s3205_s9 = sld [smem:[#allocation22_spill]] }
  0x50   : > { %897 = sbr.rel (%p2321_p2) target bundleno = 94 (0x5e), region = 96 }
  0x54   : > { %s2742_s10 = scalar_lea.vmem %s3205_s9, %s2383_s6 }
  0x55   : > { %v2512_v0 = vmov 0.0  }
  0x56   : > { %898 = vst [vmem:[%s2737_s18] sm:$0xff] %v2512_v0 }
  0x57   : > { %899 = vst [vmem:[%s2737_s18 + $0x8] sm:$0xff] %v2512_v0 }
  0x58   : > { %900 = vst [vmem:[%s2737_s18 + $0x10] sm:$0xff] %v2512_v0 }
  0x59   : > { %901 = vst [vmem:[%s2737_s18 + $0x18] sm:$0xff] %v2512_v0 }
  0x5a   : > { %902 = vst [vmem:[%s2737_s18 + $0x20] sm:$0xff] %v2512_v0 }
  0x5b   : > { %903 = vst [vmem:[%s2737_s18 + $0x28] sm:$0xff] %v2512_v0 }
  0x5c   : > { %904 = vst [vmem:[%s2737_s18 + $0x30] sm:$0xff] %v2512_v0 }
  0x5d   : > { %905 = vst [vmem:[%s2737_s18 + $0x38] sm:$0xff] %v2512_v0 }
  0x5e PF: > { %s3206_s7 = sld [smem:[#allocation10_spill]]  ;;  %v2754_v1 = vld [vmem:[%s2670_s2 + $0x30] sm:$0xff]  ;;  %v2757_v2 = vld [vmem:[%s2670_s2 + $0x38] sm:$0xff]  ;;  %v2760_v3 = vld [vmem:[%s2670_s2 + $0x20] sm:$0xff]  ;;  %vm926_vm0 = vcmask 261120   ;;  %vm980_vm1 = vcmask 64512  }
  0x5f   : > { %942 = vmatpush.msra.mxu0 %v2754_v1  ;;  %962 = vmatpush.msra.mxu1 %v2757_v2  ;;  %v2765_v4 = vld [vmem:[%s2670_s2 + $0x28] sm:$0xff]  ;;  %v2768_v5 = vld [vmem:[%s2670_s2 + $0x10] sm:$0xff]  ;;  %v2771_v6 = vld [vmem:[%s2670_s2 + $0x18] sm:$0xff]  ;;  %v2513_v19 = vmov 512.0   ;;  %vm1051_vm3 = vcmask 1043456   ;;  %s3208_s16 = sld [smem:[#allocation24_spill]] }
  0x60   : > { %v2776_v7 = vld [vmem:[%s2670_s2] sm:$0xff]  ;;  %v2779_v8 = vld [vmem:[%s2670_s2 + $0x8] sm:$0xff]  ;;  %s3207_s2 = sld [smem:[#allocation23_spill]]  ;;  %2445 = vrcp.f32 %v2513_v19  ;;  %vm1047_vm4 = vcmask 31744   ;;  %v2514_v42 = vmov 0   ;;  %s2517_s17 = smov 113  }
  0x61   : > { %943 = vmatpush.msra.mxu0 %v2760_v3  ;;  %963 = vmatpush.msra.mxu1 %v2765_v4  ;;  %v970_v43 = vld [vmem:[%s2682_s29] sm:$0xff]  ;;  %s2515_s29 = smov 112   ;;  %s2518_s26 = smov 1   ;;  %vm1221_vm8 = vcmask 908288   ;;  %vm1207_vm9 = vcmask 916480   ;;  %vm1193_vm10 = vcmask 924672  }
  0x62   : > { %2440 = vset.pattern.permute.xlu1 %v2514_v42  ;;  %2441 = vset.pattern.permute.xlu0 %v2514_v42  ;;  %v971_v48 = vld [vmem:[%s2687_s15] sm:$0xff]  ;;  %s2516_s15 = smov 111   ;;  %s2519_s27 = smov 127   ;;  %vm1179_vm11 = vcmask 1039360   ;;  %vm1166_vm12 = vcmask 7168   ;;  %vm1152_vm13 = vcmask 121856  }
  0x63   : > { %944 = vmatpush.msra.mxu0 %v2768_v5  ;;  %964 = vmatpush.msra.mxu1 %v2771_v6  ;;  %s2520_s21 = smov 16   ;;  %s2521_s24 = smov 15   ;;  %vm1124_vm14 = vcmask 138240   ;;  %vm1138_vm15 = vcmask 130048  }
  0x64   : > { %v925_v9 = vld [vmem:[%s3206_s7] sm:$0xff]  ;;  %2442 = vset.pattern.permute.xlu2 %v2514_v42  ;;  %s2522_s23 = smov 17   ;;  %s3209_s0 = sld [smem:[#allocation27_spill]] }
  0x65   : > { %945 = vmatpush.msra.mxu0 %v2776_v7  ;;  %965 = vmatpush.msra.mxu1 %v2779_v8  ;;  %v2814_v28 = vld [vmem:[%s3208_s16] sm:$0xff] }
  0x66   : > { %2322 = vmatmul.msk.f32.vlgmr.msra.gmra.mxu0 %vm926_vm0, %v925_v9  ;;  %2323 = vmatmul.msk.f32.vlgmr.msra.gmra.mxu1 %vm926_vm0, %v925_v9  ;;  %v2801_v16 = vld [vmem:[%s3207_s2] sm:$0xf]  ;;  %v2446_v20 = vpop.eup %2445 }
  0x67   : > { %v1005_v21 = vmul.f32 512.0, %v2446_v20  ;;  %vm1009_vm2 = vweird.f32 %v2446_v20 }
  0x69   : > { %v1006_v22 = vsub.f32 1.0, %v1005_v21 }
  0x6a   : > { %v2443_v59 = vld [vmem:[%s3209_s0 + $0x10] ss:$0 sm:$0xff]  ;;  %v2444_v60 = vld [vmem:[%s3209_s0 + $0x18] ss:$0 sm:$0xff] }
  0x6b   : > { %v1007_v23 = vmul.f32 %v2446_v20, %v1006_v22 }
  0x6d   : > { %v1008_v24 = vadd.f32 %v2446_v20, %v1007_v23 }
  0x6f   : > { %v2807_v25 = vsel %vm1009_vm2, %v2446_v20, %v1008_v24  ;;  %vm1232_vm2 = vcmask 588800  }
  0xe3   : > { %v2788_v10 = vpop.f32.mrf.mxu0  ;;  %v2790_v11 = vpop.f32.mrf.mxu1 }
  0xe4   : > { %v972_v12 = vadd.f32 %v2790_v11, %v2788_v10  ;;  %v975_v13 = vmul.f32 %v2788_v10, %v2788_v10  ;;  %v976_v14 = vmul.f32 %v2790_v11, %v2790_v11 }
  0xe6   : > { %973 = vadd.xlane.f32.xlu0 %v972_v12  ;;  %v977_v15 = vadd.f32 %v976_v14, %v975_v13  ;;  %v2860_v12 = vld [vmem:[%s3209_s0 + $0x8] sm:$0xff] }
  0xe7   : > { %v1214_v14 = vperm.slane %v2860_v12, 7  ;;  %v1200_v24 = vperm.slane %v2860_v12, 6 }
  0xee   : > { %978 = vadd.xlane.f32.xlu0 %v977_v15 }
 0x159   : > { %v974_v17 = vpop.xlane.xlu0 %973 }
 0x15a   : > { %999 = vmatpush.msrb.mxu0 %v974_v17 }
 0x15b   : > { %2324 = vmatmul.msk.f32.vlgmr.msrb.gmra.mxu0 %vm980_vm1, %v2801_v16 }
 0x161   : > { %v979_v18 = vpop.xlane.xlu0 %978 }
 0x162   : > { %1027 = vmatpush.msrb.mxu1 %v979_v18 }
 0x163   : > { %2325 = vmatmul.msk.f32.vlgmr.msrb.gmra.mxu1 %vm980_vm1, %v2801_v16 }
 0x1d8   : > { %v1001_v26 = vpop.f32.mrf.mxu0 }
 0x1d9   : > { %v1011_v27 = vmul.f32 %v2807_v25, %v1001_v26 }
 0x1db   : > { %2326 = vmatpush.msk.msra.mxu2 %vm1051_vm3, %v1011_v27  ;;  %v1033_v29 = vmul.f32 %v1011_v27, %v1011_v27 }
 0x1dc   : > { %2327 = vmatmul.msk.f32.vlgmr.msra.gmra.mxu2 %vm1047_vm4, %v2814_v28 }
 0x1e0   : > { %v1029_v30 = vpop.f32.mrf.mxu1 }
 0x1e1   : > { %v1032_v31 = vmul.f32 %v1029_v30, %v2807_v25 }
 0x1e3   : > { %v1034_v32 = vsub.f32 %v1032_v31, %v1033_v29 }
 0x1e5   : > { %v1035_v33 = vmax.f32 %v1034_v32, 0.0 }
 0x1e7   : > { %v1036_v34 = vadd.f32 1e-05, %v1035_v33 }
 0x1e9   : > { %2447 = vrsqrt.f32 %v1036_v34  ;;  %vm1043_vm6 = vweird.f32 %v1036_v34 }
 0x1ef   : > { %v2448_v35 = vpop.eup %2447 }
 0x1f0   : > { %v1038_v36 = vmul.f32 %v2448_v35, %v1036_v34  ;;  %vm1044_vm5 = vweird.f32 %v2448_v35 }
 0x1f1   : > { %vm1045_vm7 = vmor %vm1043_vm6, %vm1044_vm5 }
 0x1f2   : > { %v1039_v37 = vmul.f32 %v2448_v35, %v1038_v36 }
 0x1f4   : > { %v1040_v38 = vmul.f32 0.5, %v1039_v37 }
 0x1f6   : > { %v1041_v39 = vsub.f32 1.5, %v1040_v38 }
 0x1f8   : > { %v1042_v40 = vmul.f32 %v2448_v35, %v1041_v39 }
 0x1fa   : > { %v1046_v41 = vsel %vm1045_vm7, %v2448_v35, %v1042_v40  ;;  %v1186_v35 = vperm.slane %v2860_v12, 5  ;;  %v1172_v40 = vperm.slane %v2860_v12, 3 }
 0x1fb   : > { %2328 = vmatpush.msk.msra.mxu3 %vm1051_vm3, %v1046_v41 }
 0x1fc   : > { %2329 = vmatmul.msk.f32.vlgmr.msra.gmra.mxu3 %vm1047_vm4, %v2814_v28 }
 0x25f   : > { %v1072_v46 = vpop.f32.mrf.mxu2 }
 0x27f   : > { %v1095_v44 = vpop.f32.mrf.mxu3 }
 0x280   : > { %v1098_v45 = vmul.f32 %v1095_v44, %v970_v43 }
 0x282   : > { %1103 = vperm.xlu1 %2440, %v1098_v45   ;;  %v1099_v47 = vmul.f32 %v1098_v45, %v1072_v46 }
 0x284   : > { %v1100_v49 = vsub.f32 %v971_v48, %v1099_v47 }
 0x28a   : > { %1110 = vperm.xlu1 %2440, %v1100_v49  }
 0x2f4   : > { %v1104_v50 = vpop.permute.xlu1 %1103 }
 0x2f5   : > { %v1106_v51 = vmul.f32 %v1104_v50, %v2788_v10  ;;  %v1107_v52 = vmul.f32 %v1104_v50, %v2790_v11  ;;  %v2855_v11 = vld [vmem:[%s3209_s0] sm:$0xff]  ;;  %v1158_v50 = vperm.slane %v2860_v12, 2 }
 0x2f6   : > { %v1213_v13 = vperm.slane %v2855_v11, 7  ;;  %v1199_v23 = vperm.slane %v2855_v11, 6  ;;  %v1185_v34 = vperm.slane %v2855_v11, 5  ;;  %v1171_v39 = vperm.slane %v2855_v11, 3 }
 0x2f7   : > { %v1157_v49 = vperm.slane %v2855_v11, 2 }
 0x2fc   : > { %v1111_v53 = vpop.permute.xlu1 %1110 }
 0x2fd   : > { %v1113_v54 = vadd.f32 %v1111_v53, %v1106_v51  ;;  %v1114_v55 = vadd.f32 %v1111_v53, %v1107_v52 }
 0x2ff   : > { %v2826_v56 = vmax.f32 %v1113_v54, 0.0  ;;  %v2828_v57 = vmax.f32 %v1114_v55, 0.0 }
 0x301   : > { %1205 = vrot.lane.b32.xlu1 %v2828_v57, %s2515_s29  ;;  %1203 = vrot.lane.b32.xlu0 %v2826_v56, %s2515_s29 }
 0x302   : > { %1217 = vrot.lane.b32.xlu2 %v2826_v56, %s2516_s15 }
 0x309   : > { %1191 = vrot.lane.b32.xlu1 %v2828_v57, %s2517_s17  ;;  %1164 = vrot.lane.b32.xlu0 %v2826_v56, %s2518_s26 }
 0x30a   : > { %1219 = vrot.lane.b32.xlu2 %v2828_v57, %s2516_s15  ;;  %s3212_s15 = sld [smem:[#allocation26_spill]] }
 0x311   : > { %1177 = vrot.lane.b32.xlu1 %v2828_v57, %s2519_s27  ;;  %1133 = vrot.lane.b32.xlu0 %v2828_v57, %s2520_s21 }
 0x312   : > { %1189 = vrot.lane.b32.xlu2 %v2826_v56, %s2517_s17 }
 0x319   : > { %1147 = vrot.lane.b32.xlu1 %v2828_v57, %s2521_s24  ;;  %1122 = vrot.lane.b32.xlu0 %v2826_v56, %s2522_s23 }
 0x31a   : > { %1175 = vrot.lane.b32.xlu2 %v2826_v56, %s2519_s27 }
 0x321   : > { %1136 = vrot.lane.b32.xlu1 %v2826_v56, %s2520_s21 }
 0x322   : > { %1161 = vrot.lane.b32.xlu2 %v2828_v57, %s2518_s26 }
 0x32a   : > { %1150 = vrot.lane.b32.xlu2 %v2826_v56, %s2521_s24 }
 0x332   : > { %1118 = vrot.lane.b32.xlu2 %v2828_v57, %s2522_s23 }
 0x35c   : > { %v1218_v58 = vpop.permute.xlu2 %1217 }
 0x364   : > { %v1220_v61 = vpop.permute.xlu2 %1219 }
 0x365   : > { %v1222_v62 = vsel %vm1221_vm8, %v1218_v58, %v1220_v61  ;;  %v1226_v63 = vsel %vm1221_vm8, %v1220_v61, %v1218_v58  ;;  %v1130_v61 = vperm.slane %v2860_v12, 0 }
 0x366   : > { %v1229_v0 = vmul.f32 %v2443_v59, %v1222_v62  ;;  %v1230_v9 = vmul.f32 %v2444_v60, %v1226_v63  ;;  %v1129_v60 = vperm.slane %v2855_v11, 0 }
 0x368   : > { %1243 = vmatpush.msra.mxu0 %v1229_v0  ;;  %1263 = vmatpush.msra.mxu1 %v1230_v9 }
 0x36c   : > { %v1190_v10 = vpop.permute.xlu2 %1189 }
 0x373   : > { %v1206_v15 = vpop.permute.xlu1 %1205  ;;  %v1204_v17 = vpop.permute.xlu0 %1203 }
 0x374   : > { %v1208_v18 = vsel %vm1207_vm9, %v1204_v17, %v1206_v15  ;;  %v1212_v19 = vsel %vm1207_vm9, %v1206_v15, %v1204_v17  ;;  %v1176_v20 = vpop.permute.xlu2 %1175 }
 0x375   : > { %v1215_v21 = vmul.f32 %v1213_v13, %v1208_v18  ;;  %v1216_v22 = vmul.f32 %v1214_v14, %v1212_v19  ;;  %v1231_v18 = vld [vmem:[%s2693_s14] sm:$0xff]  ;;  %s3210_s14 = sld [smem:[#allocation11_spill]] }
 0x377   : > { %1244 = vmatpush.msra.mxu0 %v1215_v21  ;;  %1264 = vmatpush.msra.mxu1 %v1216_v22 }
 0x37b   : > { %v1192_v26 = vpop.permute.xlu1 %1191  ;;  %v1165_v32 = vpop.permute.xlu0 %1164 }
 0x37c   : > { %v1194_v27 = vsel %vm1193_vm10, %v1190_v10, %v1192_v26  ;;  %v1198_v29 = vsel %vm1193_vm10, %v1192_v26, %v1190_v10  ;;  %v1162_v33 = vpop.permute.xlu2 %1161 }
 0x37d   : > { %v1201_v30 = vmul.f32 %v1199_v23, %v1194_v27  ;;  %v1202_v31 = vmul.f32 %v1200_v24, %v1198_v29  ;;  %v1167_v43 = vsel %vm1166_vm12, %v1165_v32, %v1162_v33  ;;  %v1170_v44 = vsel %vm1166_vm12, %v1162_v33, %v1165_v32 }
 0x37e   : > { %v1173_v47 = vmul.f32 %v1171_v39, %v1170_v44  ;;  %v1174_v48 = vmul.f32 %v1172_v40, %v1167_v43  ;;  %v1276_v40 = vld [vmem:[%s3210_s14] sm:$0xff] }
 0x37f   : > { %1245 = vmatpush.msra.mxu0 %v1201_v30  ;;  %1265 = vmatpush.msra.mxu1 %v1202_v31 }
 0x383   : > { %v1178_v36 = vpop.permute.xlu1 %1177  ;;  %v1134_v45 = vpop.permute.xlu0 %1133 }
 0x384   : > { %v1180_v37 = vsel %vm1179_vm11, %v1176_v20, %v1178_v36  ;;  %v1184_v38 = vsel %vm1179_vm11, %v1178_v36, %v1176_v20  ;;  %v1151_v46 = vpop.permute.xlu2 %1150 }
 0x385   : > { %v1187_v41 = vmul.f32 %v1185_v34, %v1180_v37  ;;  %v1188_v42 = vmul.f32 %v1186_v35, %v1184_v38 }
 0x387   : > { %1246 = vmatpush.msra.mxu0 %v1187_v41  ;;  %1266 = vmatpush.msra.mxu1 %v1188_v42 }
 0x389   : > { %1247 = vmatpush.msra.mxu0 %v2826_v56  ;;  %1267 = vmatpush.msra.mxu1 %v2828_v57  ;;  %v1143_v56 = vperm.slane %v2855_v11, 1  ;;  %v1144_v57 = vperm.slane %v2860_v12, 1 }
 0x38b   : > { %v1148_v51 = vpop.permute.xlu1 %1147  ;;  %1248 = vmatpush.msra.mxu0 %v1173_v47  ;;  %1268 = vmatpush.msra.mxu1 %v1174_v48  ;;  %v1123_v58 = vpop.permute.xlu0 %1122 }
 0x38c   : > { %v1153_v52 = vsel %vm1152_vm13, %v1151_v46, %v1148_v51  ;;  %v1156_v53 = vsel %vm1152_vm13, %v1148_v51, %v1151_v46  ;;  %v1119_v59 = vpop.permute.xlu2 %1118 }
 0x38d   : > { %v1159_v54 = vmul.f32 %v1157_v49, %v1156_v53  ;;  %v1160_v55 = vmul.f32 %v1158_v50, %v1153_v52  ;;  %v1125_v63 = vsel %vm1124_vm14, %v1123_v58, %v1119_v59  ;;  %v1128_v0 = vsel %vm1124_vm14, %v1119_v59, %v1123_v58  ;;  %v1734_v59 = vld [vmem:[%s2742_s10 + $0x18] sm:$0xff] }
 0x38e   : > { %v1131_v15 = vmul.f32 %v1129_v60, %v1128_v0  ;;  %v1132_v17 = vmul.f32 %v1130_v61, %v1125_v63 }
 0x38f   : > { %1249 = vmatpush.msra.mxu0 %v1159_v54  ;;  %1269 = vmatpush.msra.mxu1 %v1160_v55  ;;  %v1408_v55 = vld [vmem:[%s2727_s22 + $0x8] sm:$0xff] }
 0x393   : > { %v1137_v62 = vpop.permute.xlu1 %1136 }
 0x394   : > { %v1139_v9 = vsel %vm1138_vm15, %v1137_v62, %v1134_v45  ;;  %v1142_v10 = vsel %vm1138_vm15, %v1134_v45, %v1137_v62  ;;  %v1277_v45 = vld [vmem:[%s2706_s20] sm:$0xff] }
 0x395   : > { %v1145_v13 = vmul.f32 %v1143_v56, %v1142_v10  ;;  %v1146_v14 = vmul.f32 %v1144_v57, %v1139_v9 }
 0x397   : > { %1250 = vmatpush.msra.mxu0 %v1145_v13  ;;  %1270 = vmatpush.msra.mxu1 %v1146_v14 }
 0x399   : > { %1251 = vmatpush.msra.mxu0 %v1131_v15  ;;  %1271 = vmatpush.msra.mxu1 %v1132_v17 }
 0x39a   : > { %2330 = vmatmul.msk.f32.vlgmr.msra.gmra.mxu0 %vm1232_vm2, %v1231_v18  ;;  %2331 = vmatmul.msk.f32.vlgmr.msra.gmra.mxu1 %vm1232_vm2, %v1231_v18 }
 0x417   : > { %v1253_v11 = vpop.f32.mrf.mxu0  ;;  %v1273_v19 = vpop.f32.mrf.mxu1 }
 0x418   : > { %v1278_v12 = vadd.f32 %v1273_v19, %v1253_v11  ;;  %v1281_v20 = vmul.f32 %v1253_v11, %v1253_v11  ;;  %v1282_v21 = vmul.f32 %v1273_v19, %v1273_v19 }
 0x41a   : > { %1279 = vadd.xlane.f32.xlu1 %v1278_v12  ;;  %v1283_v22 = vadd.f32 %v1282_v21, %v1281_v20 }
 0x41c   : > { %1284 = vadd.xlane.f32.xlu2 %v1283_v22 }
 0x48d   : > { %v1280_v23 = vpop.xlane.xlu1 %1279 }
 0x48e   : > { %1301 = vmatpush.msrb.mxu2 %v1280_v23 }
 0x48f   : > { %v1285_v24 = vpop.xlane.xlu2 %1284  ;;  %2332 = vmatmul.msk.f32.vlgmr.msrb.gmra.mxu2 %vm980_vm1, %v2801_v16 }
 0x490   : > { %1322 = vmatpush.msrb.mxu3 %v1285_v24 }
 0x491   : > { %2333 = vmatmul.msk.f32.vlgmr.msrb.gmra.mxu3 %vm980_vm1, %v2801_v16 }
 0x512   : > { %v1303_v26 = vpop.f32.mrf.mxu2 }
 0x513   : > { %v1306_v27 = vmul.f32 %v1303_v26, %v2807_v25 }
 0x514   : > { %v1324_v29 = vpop.f32.mrf.mxu3 }
 0x515   : > { %v1328_v30 = vmul.f32 %v1306_v27, %v1306_v27  ;;  %v1327_v31 = vmul.f32 %v1324_v29, %v2807_v25  ;;  %2334 = vmatpush.msk.msra.mxu2 %vm1051_vm3, %v1306_v27 }
 0x516   : > { %2335 = vmatmul.msk.f32.vlgmr.msra.gmra.mxu2 %vm1047_vm4, %v2814_v28 }
 0x517   : > { %v1329_v32 = vsub.f32 %v1327_v31, %v1328_v30 }
 0x519   : > { %v1330_v33 = vmax.f32 %v1329_v32, 0.0 }
 0x51b   : > { %v1331_v34 = vadd.f32 1e-05, %v1330_v33 }
 0x51d   : > { %2449 = vrsqrt.f32 %v1331_v34  ;;  %vm1338_vm6 = vweird.f32 %v1331_v34 }
 0x523   : > { %v2450_v35 = vpop.eup %2449 }
 0x524   : > { %v1333_v36 = vmul.f32 %v2450_v35, %v1331_v34  ;;  %vm1339_vm5 = vweird.f32 %v2450_v35 }
 0x525   : > { %vm1340_vm7 = vmor %vm1338_vm6, %vm1339_vm5 }
 0x526   : > { %v1334_v16 = vmul.f32 %v2450_v35, %v1333_v36 }
 0x528   : > { %v1335_v37 = vmul.f32 0.5, %v1334_v16 }
 0x52a   : > { %v1336_v38 = vsub.f32 1.5, %v1335_v37 }
 0x52c   : > { %v1337_v39 = vmul.f32 %v2450_v35, %v1336_v38 }
 0x52e   : > { %v1341_v25 = vsel %vm1340_vm7, %v2450_v35, %v1337_v39 }
 0x52f   : > { %2336 = vmatpush.msk.msra.mxu3 %vm1051_vm3, %v1341_v25 }
 0x530   : > { %2337 = vmatmul.msk.f32.vlgmr.msra.gmra.mxu3 %vm1047_vm4, %v2814_v28  ;;  %v1407_v28 = vld [vmem:[%s2727_s22] sm:$0xff] }
 0x599   : > { %v1362_v43 = vpop.f32.mrf.mxu2 }
 0x5b3   : > { %v1385_v41 = vpop.f32.mrf.mxu3 }
 0x5b4   : > { %v1388_v42 = vmul.f32 %v1385_v41, %v1276_v40 }
 0x5b6   : > { %1393 = vperm.xlu0 %2441, %v1388_v42   ;;  %v1389_v44 = vmul.f32 %v1388_v42, %v1362_v43 }
 0x5b8   : > { %v1390_v46 = vsub.f32 %v1277_v45, %v1389_v44 }
 0x5be   : > { %1400 = vperm.xlu0 %2441, %v1390_v46  }
 0x628   : > { %v1394_v47 = vpop.permute.xlu0 %1393 }
 0x629   : > { %v1396_v48 = vmul.f32 %v1394_v47, %v1253_v11  ;;  %v1397_v49 = vmul.f32 %v1394_v47, %v1273_v19 }
 0x630   : > { %v1401_v50 = vpop.permute.xlu0 %1400 }
 0x631   : > { %v1403_v51 = vadd.f32 %v1401_v50, %v1396_v48  ;;  %v1404_v52 = vadd.f32 %v1401_v50, %v1397_v49 }
 0x633   : > { %v1405_v53 = vmax.f32 %v1403_v51, 0.0  ;;  %v1406_v54 = vmax.f32 %v1404_v52, 0.0 }
 0x635   : > { %1438 = vmatpush.msrb.mxu0 %v1405_v53  ;;  %1467 = vmatpush.msrb.mxu1 %v1406_v54 }
 0x636   : > { %2338 = vmatmul.msk.f32.vlgmr.msrb.gmra.mxu0 %vm980_vm1, %v1407_v28  ;;  %2342 = vmatmul.msk.f32.vlgmr.msrb.gmra.mxu1 %vm980_vm1, %v1407_v28 }
 0x637   : > { %1759 = vmatpush.msra.mxu0 %v2754_v1  ;;  %1788 = vmatpush.msra.mxu1 %v2757_v2  ;;  %v1409_v1 = vld [vmem:[%s2727_s22 + $0x10] sm:$0xff]  ;;  %v1410_v2 = vld [vmem:[%s2727_s22 + $0x18] sm:$0xff]  ;;  %s3211_s22 = sld [smem:[#allocation25_spill]] }
 0x639   : > { %1760 = vmatpush.msra.mxu0 %v2760_v3  ;;  %1789 = vmatpush.msra.mxu1 %v2765_v4  ;;  %v1731_v3 = vld [vmem:[%s2742_s10] sm:$0xff]  ;;  %v1732_v4 = vld [vmem:[%s2742_s10 + $0x8] sm:$0xff] }
 0x63b   : > { %1761 = vmatpush.msra.mxu0 %v2768_v5  ;;  %1790 = vmatpush.msra.mxu1 %v2771_v6 }
 0x63d   : > { %1762 = vmatpush.msra.mxu0 %v2776_v7  ;;  %1791 = vmatpush.msra.mxu1 %v2779_v8  ;;  %v1733_v7 = vld [vmem:[%s2742_s10 + $0x10] sm:$0xff]  ;;  %v3008_v52 = vld [vmem:[%s3211_s22] sm:$0xf] }
 0x63e   : > { %2339 = vmatmul.msk.f32.gmra.mxu0 %vm980_vm1, %v1408_v55  ;;  %2343 = vmatmul.msk.f32.gmra.mxu1 %vm980_vm1, %v1408_v55  ;;  %v2523_v55 = vmov 2048.0  }
 0x63f   : > { %2451 = vrcp.f32 %v2523_v55 }
 0x646   : > { %2340 = vmatmul.msk.f32.gmra.mxu0 %vm980_vm1, %v1409_v1  ;;  %2344 = vmatmul.msk.f32.gmra.mxu1 %vm980_vm1, %v1409_v1  ;;  %v2452_v1 = vpop.eup %2451 }
 0x64e   : > { %2341 = vmatmul.msk.f32.gmra.mxu0 %vm980_vm1, %v1410_v2  ;;  %2345 = vmatmul.msk.f32.gmra.mxu1 %vm980_vm1, %v1410_v2  ;;  %v1545_v2 = vmul.f32 2048.0, %v2452_v1  ;;  %vm1549_vm1 = vweird.f32 %v2452_v1 }
 0x656   : > { %2358 = vmatmul.msk.f32.vlgmr.msra.gmra.mxu0 %vm926_vm0, %v1731_v3  ;;  %2362 = vmatmul.msk.f32.vlgmr.msra.gmra.mxu1 %vm926_vm0, %v1731_v3  ;;  %v1546_v3 = vsub.f32 1.0, %v1545_v2  ;;  %v1483_v2 = vld [vmem:[%s2712_s11 + $0x10] sm:$0xff] }
 0x65e   : > { %2359 = vmatmul.msk.f32.gmra.mxu0 %vm926_vm0, %v1732_v4  ;;  %2363 = vmatmul.msk.f32.gmra.mxu1 %vm926_vm0, %v1732_v4  ;;  %v1547_v4 = vmul.f32 %v2452_v1, %v1546_v3  ;;  %v1486_v3 = vld [vmem:[%s2717_s5 + $0x8] sm:$0xff] }
 0x666   : > { %2360 = vmatmul.msk.f32.gmra.mxu0 %vm926_vm0, %v1733_v7  ;;  %2364 = vmatmul.msk.f32.gmra.mxu1 %vm926_vm0, %v1733_v7 }
 0x66e   : > { %2361 = vmatmul.msk.f32.gmra.mxu0 %vm926_vm0, %v1734_v59  ;;  %2365 = vmatmul.msk.f32.gmra.mxu1 %vm926_vm0, %v1734_v59  ;;  %v1548_v59 = vadd.f32 %v2452_v1, %v1547_v4 }
 0x6b3   : > { %v2919_v5 = vpop.f32.mrf.mxu0  ;;  %v2921_v6 = vpop.f32.mrf.mxu1 }
 0x6b4   : > { %v1489_v19 = vadd.f32 %v2921_v6, %v2919_v5  ;;  %v1501_v20 = vmul.f32 %v2919_v5, %v2919_v5  ;;  %v1502_v21 = vmul.f32 %v2921_v6, %v2921_v6 }
 0x6b6   : > { %v1509_v22 = vadd.f32 %v1502_v21, %v1501_v20 }
 0x6bb   : > { %v2926_v8 = vpop.f32.mrf.mxu0  ;;  %v2928_v58 = vpop.f32.mrf.mxu1 }
 0x6bc   : > { %v1492_v10 = vadd.f32 %v2928_v58, %v2926_v8  ;;  %v1503_v18 = vmul.f32 %v2926_v8, %v2926_v8  ;;  %v1504_v11 = vmul.f32 %v2928_v58, %v2928_v58 }
 0x6be   : > { %v1512_v12 = vadd.f32 %v1504_v11, %v1503_v18 }
 0x6c3   : > { %v2933_v56 = vpop.f32.mrf.mxu0  ;;  %v2935_v57 = vpop.f32.mrf.mxu1 }
 0x6c4   : > { %v1495_v60 = vadd.f32 %v2935_v57, %v2933_v56  ;;  %v1505_v61 = vmul.f32 %v2933_v56, %v2933_v56  ;;  %v1506_v62 = vmul.f32 %v2935_v57, %v2935_v57 }
 0x6c6   : > { %1496 = vadd.xlane.f32.xlu2 %v1495_v60  ;;  %v1515_v63 = vadd.f32 %v1506_v62, %v1505_v61  ;;  %v3014_v61 = vsel %vm1549_vm1, %v2452_v1, %v1548_v59 }
 0x6c8   : > { %1516 = vadd.xlane.f32.xlu1 %v1515_v63 }
 0x6cb   : > { %v2943_v0 = vpop.f32.mrf.mxu0  ;;  %v2945_v9 = vpop.f32.mrf.mxu1 }
 0x6cc   : > { %v1498_v13 = vadd.f32 %v2945_v9, %v2943_v0  ;;  %v1507_v14 = vmul.f32 %v2943_v0, %v2943_v0  ;;  %v1508_v15 = vmul.f32 %v2945_v9, %v2945_v9 }
 0x6ce   : > { %1493 = vadd.xlane.f32.xlu2 %v1492_v10  ;;  %1499 = vadd.xlane.f32.xlu0 %v1498_v13  ;;  %v1518_v17 = vadd.f32 %v1508_v15, %v1507_v14  ;;  %v3020_v13 = vld [vmem:[%s3212_s15] sm:$0xff] }
 0x6d0   : > { %1519 = vadd.xlane.f32.xlu1 %v1518_v17 }
 0x6d3   : > { %v2965_v23 = vpop.f32.mrf.mxu0  ;;  %v2967_v24 = vpop.f32.mrf.mxu1 }
 0x6d4   : > { %v1825_v41 = vmul.f32 %v2965_v23, %v2965_v23  ;;  %v1826_v42 = vmul.f32 %v2967_v24, %v2967_v24  ;;  %v1813_v51 = vadd.f32 %v2967_v24, %v2965_v23 }
 0x6d6   : > { %1490 = vadd.xlane.f32.xlu2 %v1489_v19  ;;  %v1833_v49 = vadd.f32 %v1826_v42, %v1825_v41  ;;  %v3029_v19 = vld [vmem:[%s3212_s15 + $0x8] sm:$0xff] }
 0x6d8   : > { %1513 = vadd.xlane.f32.xlu1 %v1512_v12 }
 0x6db   : > { %v2969_v26 = vpop.f32.mrf.mxu0  ;;  %v2971_v27 = vpop.f32.mrf.mxu1 }
 0x6dc   : > { %v1816_v29 = vadd.f32 %v2971_v27, %v2969_v26  ;;  %v1827_v46 = vmul.f32 %v2969_v26, %v2969_v26  ;;  %v1828_v47 = vmul.f32 %v2971_v27, %v2971_v27 }
 0x6de   : > { %1510 = vadd.xlane.f32.xlu2 %v1509_v22  ;;  %v1836_v50 = vadd.f32 %v1828_v47, %v1827_v46  ;;  %v3036_v22 = vld [vmem:[%s3212_s15 + $0x10] sm:$0xff]  ;;  %v1481_v46 = vld [vmem:[%s2712_s11] sm:$0xff] }
 0x6e0   : > { %1817 = vadd.xlane.f32.xlu1 %v1816_v29 }
 0x6e3   : > { %v2975_v30 = vpop.f32.mrf.mxu0  ;;  %v2977_v31 = vpop.f32.mrf.mxu1 }
 0x6e4   : > { %v1819_v32 = vadd.f32 %v2977_v31, %v2975_v30  ;;  %v1829_v34 = vmul.f32 %v2975_v30, %v2975_v30  ;;  %v1830_v35 = vmul.f32 %v2977_v31, %v2977_v31 }
 0x6e6   : > { %1820 = vadd.xlane.f32.xlu0 %v1819_v32  ;;  %v1839_v16 = vadd.f32 %v1830_v35, %v1829_v34  ;;  %v3043_v34 = vld [vmem:[%s3212_s15 + $0x18] sm:$0xff] }
 0x6eb   : > { %v2985_v37 = vpop.f32.mrf.mxu0  ;;  %v2987_v38 = vpop.f32.mrf.mxu1 }
 0x6ec   : > { %v1831_v39 = vmul.f32 %v2985_v37, %v2985_v37  ;;  %v1832_v25 = vmul.f32 %v2987_v38, %v2987_v38  ;;  %v1822_v40 = vadd.f32 %v2987_v38, %v2985_v37 }
 0x6ee   : > { %v1842_v45 = vadd.f32 %v1832_v25, %v1831_v39  ;;  %1823 = vadd.xlane.f32.xlu1 %v1822_v40  ;;  %1840 = vadd.xlane.f32.xlu0 %v1839_v16 }
 0x6f0   : > { %1843 = vadd.xlane.f32.xlu2 %v1842_v45 }
 0x6f6   : > { %1834 = vadd.xlane.f32.xlu0 %v1833_v49  ;;  %1837 = vadd.xlane.f32.xlu1 %v1836_v50  ;;  %v1485_v50 = vld [vmem:[%s2717_s5] sm:$0xff] }
 0x6f8   : > { %1814 = vadd.xlane.f32.xlu2 %v1813_v51 }
 0x739   : > { %v1497_v33 = vpop.xlane.xlu2 %1496 }
 0x73b   : > { %v1517_v36 = vpop.xlane.xlu1 %1516 }
 0x741   : > { %v1494_v43 = vpop.xlane.xlu2 %1493  ;;  %v1500_v44 = vpop.xlane.xlu0 %1499 }
 0x742   : > { %1536 = vmatpush.msrb.mxu2 %v1500_v44 }
 0x743   : > { %v1520_v48 = vpop.xlane.xlu1 %1519 }
 0x744   : > { %1537 = vmatpush.msrb.mxu2 %v1497_v33  ;;  %1564 = vmatpush.msrb.mxu3 %v1520_v48 }
 0x746   : > { %1538 = vmatpush.msrb.mxu2 %v1494_v43  ;;  %1565 = vmatpush.msrb.mxu3 %v1517_v36 }
 0x749   : > { %v1491_v53 = vpop.xlane.xlu2 %1490 }
 0x74a   : > { %1539 = vmatpush.msrb.mxu2 %v1491_v53 }
 0x74b   : > { %v1514_v54 = vpop.xlane.xlu1 %1513  ;;  %2346 = vmatmul.msk.f32.vlgmr.msrb.gmra.mxu2 %vm926_vm0, %v3008_v52 }
 0x74c   : > { %1566 = vmatpush.msrb.mxu3 %v1514_v54  ;;  %v1482_v54 = vld [vmem:[%s2712_s11 + $0x8] sm:$0xff] }
 0x751   : > { %v1511_v28 = vpop.xlane.xlu2 %1510 }
 0x752   : > { %1567 = vmatpush.msrb.mxu3 %v1511_v28 }
 0x753   : > { %2347 = vmatmul.msk.f32.vlgmr.msrb.gmra.mxu3 %vm926_vm0, %v3008_v52  ;;  %v1818_v7 = vpop.xlane.xlu1 %1817 }
 0x759   : > { %v1821_v14 = vpop.xlane.xlu0 %1820 }
 0x761   : > { %v1824_v10 = vpop.xlane.xlu1 %1823  ;;  %v1841_v16 = vpop.xlane.xlu0 %1840 }
 0x763   : > { %v1844_v60 = vpop.xlane.xlu2 %1843 }
 0x769   : > { %v1838_v40 = vpop.xlane.xlu1 %1837  ;;  %v1835_v41 = vpop.xlane.xlu0 %1834 }
 0x76b   : > { %v1815_v17 = vpop.xlane.xlu2 %1814 }
 0x7ce   : > { %v1541_v62 = vpop.f32.mrf.mxu2 }
 0x7cf   : > { %v1551_v63 = vmul.f32 %v3014_v61, %v1541_v62 }
 0x7d1   : > { %2348 = vmatpush.msk.msra.mxu2 %vm1051_vm3, %v1551_v63  ;;  %v1573_v15 = vmul.f32 %v1551_v63, %v1551_v63 }
 0x7d2   : > { %2349 = vmatmul.msk.f32.vlgmr.msra.gmra.mxu2 %vm1047_vm4, %v3020_v13 }
 0x7d3   : > { %1857 = vmatpush.msrb.mxu2 %v1824_v10  ;;  %v1484_v10 = vld [vmem:[%s2712_s11 + $0x18] sm:$0xff] }
 0x7d5   : > { %1858 = vmatpush.msrb.mxu2 %v1821_v14 }
 0x7d6   : > { %v1569_v18 = vpop.f32.mrf.mxu3 }
 0x7d7   : > { %1859 = vmatpush.msrb.mxu2 %v1818_v7  ;;  %v1572_v11 = vmul.f32 %v1569_v18, %v3014_v61 }
 0x7d9   : > { %1860 = vmatpush.msrb.mxu2 %v1815_v17  ;;  %v1574_v12 = vsub.f32 %v1572_v11, %v1573_v15  ;;  %v1488_v17 = vld [vmem:[%s2717_s5 + $0x18] sm:$0xff] }
 0x7da   : > { %2350 = vmatmul.msk.f32.gmra.mxu2 %vm1047_vm4, %v3029_v19 }
 0x7db   : > { %v1575_v20 = vmax.f32 %v1574_v12, 0.0 }
 0x7dd   : > { %v1576_v21 = vadd.f32 1e-05, %v1575_v20 }
 0x7df   : > { %2453 = vrsqrt.f32 %v1576_v21  ;;  %vm1583_vm9 = vweird.f32 %v1576_v21 }
 0x7e2   : > { %2351 = vmatmul.msk.f32.gmra.mxu2 %vm1047_vm4, %v3036_v22 }
 0x7e5   : > { %v2454_v29 = vpop.eup %2453 }
 0x7e6   : > { %v1578_v32 = vmul.f32 %v2454_v29, %v1576_v21  ;;  %vm1584_vm8 = vweird.f32 %v2454_v29 }
 0x7e7   : > { %vm1585_vm10 = vmor %vm1583_vm9, %vm1584_vm8 }
 0x7e8   : > { %v1579_v33 = vmul.f32 %v2454_v29, %v1578_v32 }
 0x7ea   : > { %v1580_v35 = vmul.f32 0.5, %v1579_v33  ;;  %2352 = vmatmul.msk.f32.gmra.mxu2 %vm1047_vm4, %v3043_v34 }
 0x7ec   : > { %v1581_v36 = vsub.f32 1.5, %v1580_v35 }
 0x7ee   : > { %v1582_v39 = vmul.f32 %v2454_v29, %v1581_v36 }
 0x7f0   : > { %v1586_v25 = vsel %vm1585_vm10, %v2454_v29, %v1582_v39 }
 0x7f1   : > { %2353 = vmatpush.msk.msra.mxu3 %vm1051_vm3, %v1586_v25 }
 0x7f2   : > { %2354 = vmatmul.msk.f32.vlgmr.msra.gmra.mxu3 %vm1047_vm4, %v3020_v13  ;;  %2366 = vmatmul.msk.f32.vlgmr.msrb.gmra.mxu2 %vm926_vm0, %v3008_v52 }
 0x7f3   : > { %1878 = vmatpush.msrb.mxu3 %v1844_v60  ;;  %v1487_v60 = vld [vmem:[%s2717_s5 + $0x10] sm:$0xff] }
 0x7f5   : > { %1879 = vmatpush.msrb.mxu3 %v1841_v16 }
 0x7f7   : > { %1880 = vmatpush.msrb.mxu3 %v1838_v40 }
 0x7f9   : > { %1881 = vmatpush.msrb.mxu3 %v1835_v41 }
 0x7fa   : > { %2355 = vmatmul.msk.f32.gmra.mxu3 %vm1047_vm4, %v3029_v19 }
 0x802   : > { %2356 = vmatmul.msk.f32.gmra.mxu3 %vm1047_vm4, %v3036_v22 }
 0x80a   : > { %2357 = vmatmul.msk.f32.gmra.mxu3 %vm1047_vm4, %v3043_v34 }
 0x812   : > { %2367 = vmatmul.msk.f32.vlgmr.msrb.gmra.mxu3 %vm926_vm0, %v3008_v52 }
 0x855   : > { %v1619_v42 = vpop.f32.mrf.mxu2 }
 0x85d   : > { %v1622_v43 = vpop.f32.mrf.mxu2 }
 0x865   : > { %v1625_v44 = vpop.f32.mrf.mxu2 }
 0x86d   : > { %v1628_v45 = vpop.f32.mrf.mxu2 }
 0x875   : > { %v1651_v47 = vpop.f32.mrf.mxu3  ;;  %v1862_v49 = vpop.f32.mrf.mxu2 }
 0x876   : > { %v1663_v48 = vmul.f32 %v1651_v47, %v1481_v46  ;;  %v1865_v51 = vmul.f32 %v1862_v49, %v3014_v61 }
 0x878   : > { %v1667_v53 = vmul.f32 %v1663_v48, %v1619_v42  ;;  %1677 = vperm.xlu2 %2442, %v1663_v48   ;;  %2368 = vmatpush.msk.msra.mxu2 %vm1051_vm3, %v1865_v51  ;;  %v1887_v12 = vmul.f32 %v1865_v51, %v1865_v51  ;;  %v1805_v42 = vld [vmem:[%s2722_s4] sm:$0xff]  ;;  %v1806_v48 = vld [vmem:[%s2722_s4 + $0x8] sm:$0xff] }
 0x879   : > { %2369 = vmatmul.msk.f32.vlgmr.msra.gmra.mxu2 %vm1047_vm4, %v3020_v13 }
 0x87a   : > { %v1671_v52 = vsub.f32 %v1485_v50, %v1667_v53 }
 0x87c   : > { %1705 = vperm.xlu0 %2441, %v1671_v52   ;;  %v1810_v52 = vld [vmem:[%s2732_s3 + $0x8] sm:$0xff] }
 0x87d   : > { %v1654_v28 = vpop.f32.mrf.mxu3 }
 0x87e   : > { %v1664_v55 = vmul.f32 %v1654_v28, %v1482_v54  ;;  %v1808_v54 = vld [vmem:[%s2722_s4 + $0x18] sm:$0xff] }
 0x880   : > { %1682 = vperm.xlu1 %2440, %v1664_v55   ;;  %v1668_v1 = vmul.f32 %v1664_v55, %v1622_v43 }
 0x881   : > { %2370 = vmatmul.msk.f32.gmra.mxu2 %vm1047_vm4, %v3029_v19 }
 0x882   : > { %v1672_v59 = vsub.f32 %v1486_v3, %v1668_v1  ;;  %v1812_v3 = vld [vmem:[%s2732_s3 + $0x18] sm:$0xff] }
 0x885   : > { %v1657_v4 = vpop.f32.mrf.mxu3 }
 0x886   : > { %v1665_v7 = vmul.f32 %v1657_v4, %v1483_v2 }
 0x888   : > { %v1669_v62 = vmul.f32 %v1665_v7, %v1625_v44  ;;  %1710 = vperm.xlu1 %2440, %v1672_v59   ;;  %1687 = vperm.xlu0 %2441, %v1665_v7  }
 0x889   : > { %2371 = vmatmul.msk.f32.gmra.mxu2 %vm1047_vm4, %v3036_v22 }
 0x88a   : > { %v1673_v63 = vsub.f32 %v1487_v60, %v1669_v62  ;;  %v1811_v60 = vld [vmem:[%s2732_s3 + $0x10] sm:$0xff] }
 0x88c   : > { %1715 = vperm.xlu2 %2442, %v1673_v63  }
 0x88d   : > { %v1660_v14 = vpop.f32.mrf.mxu3 }
 0x88e   : > { %v1666_v15 = vmul.f32 %v1660_v14, %v1484_v10 }
 0x890   : > { %v1670_v18 = vmul.f32 %v1666_v15, %v1628_v45  ;;  %v1809_v45 = vld [vmem:[%s2732_s3] sm:$0xff] }
 0x891   : > { %2372 = vmatmul.msk.f32.gmra.mxu2 %vm1047_vm4, %v3043_v34 }
 0x892   : > { %v1674_v11 = vsub.f32 %v1488_v17, %v1670_v18 }
 0x894   : > { %1692 = vperm.xlu2 %2442, %v1666_v15   ;;  %1720 = vperm.xlu0 %2441, %v1674_v11  }
 0x895   : > { %v1883_v20 = vpop.f32.mrf.mxu3 }
 0x896   : > { %v1886_v21 = vmul.f32 %v1883_v20, %v3014_v61 }
 0x898   : > { %v1888_v29 = vsub.f32 %v1886_v21, %v1887_v12 }
 0x89a   : > { %v1889_v32 = vmax.f32 %v1888_v29, 0.0 }
 0x89c   : > { %v1890_v33 = vadd.f32 1e-05, %v1889_v32 }
 0x89e   : > { %2455 = vrsqrt.f32 %v1890_v33  ;;  %vm1897_vm11 = vweird.f32 %v1890_v33 }
 0x8a4   : > { %v2456_v35 = vpop.eup %2455 }
 0x8a5   : > { %v1892_v36 = vmul.f32 %v2456_v35, %v1890_v33  ;;  %vm1898_vm0 = vweird.f32 %v2456_v35 }
 0x8a6   : > { %vm1899_vm12 = vmor %vm1897_vm11, %vm1898_vm0 }
 0x8a7   : > { %v1893_v16 = vmul.f32 %v2456_v35, %v1892_v36 }
 0x8a9   : > { %v1894_v39 = vmul.f32 0.5, %v1893_v16 }
 0x8ab   : > { %v1895_v25 = vsub.f32 1.5, %v1894_v39 }
 0x8ad   : > { %v1896_v40 = vmul.f32 %v2456_v35, %v1895_v25 }
 0x8af   : > { %v1900_v41 = vsel %vm1899_vm12, %v2456_v35, %v1896_v40 }
 0x8b0   : > { %2373 = vmatpush.msk.msra.mxu3 %vm1051_vm3, %v1900_v41  ;;  %v2033_v41 = vld [vmem:[%s2737_s18] sm:$0xff] }
 0x8b1   : > { %2374 = vmatmul.msk.f32.vlgmr.msra.gmra.mxu3 %vm1047_vm4, %v3020_v13 }
 0x8b9   : > { %2375 = vmatmul.msk.f32.gmra.mxu3 %vm1047_vm4, %v3029_v19 }
 0x8c1   : > { %2376 = vmatmul.msk.f32.gmra.mxu3 %vm1047_vm4, %v3036_v22  ;;  %v1807_v22 = vld [vmem:[%s2722_s4 + $0x10] sm:$0xff] }
 0x8c9   : > { %2377 = vmatmul.msk.f32.gmra.mxu3 %vm1047_vm4, %v3043_v34 }
 0x8d2   : > { %v1678_v63 = vpop.permute.xlu2 %1677 }
 0x8d3   : > { %v1695_v20 = vmul.f32 %v1678_v63, %v2919_v5  ;;  %v1696_v21 = vmul.f32 %v1678_v63, %v2921_v6  ;;  %v2040_v63 = vld [vmem:[%s2737_s18 + $0x38] sm:$0xff] }
 0x8e6   : > { %v3096_v14 = vpop.permute.xlu2 %1715 }
 0x8ee   : > { %v1706_v15 = vpop.permute.xlu0 %1705  ;;  %v1693_v18 = vpop.permute.xlu2 %1692 }
 0x8ef   : > { %v1723_v35 = vadd.f32 %v1706_v15, %v1695_v20  ;;  %v1724_v36 = vadd.f32 %v1706_v15, %v1696_v21 }
 0x8f2   : > { %v1683_v10 = vpop.permute.xlu1 %1682 }
 0x8fa   : > { %v1711_v17 = vpop.permute.xlu1 %1710  ;;  %v1688_v11 = vpop.permute.xlu0 %1687 }
 0x8fc   : > { %v1921_v61 = vpop.f32.mrf.mxu2 }
 0x904   : > { %v1924_v13 = vpop.f32.mrf.mxu2 }
 0x906   : > { %v1721_v5 = vpop.permute.xlu0 %1720 }
 0x90c   : > { %v1927_v50 = vpop.f32.mrf.mxu2 }
 0x914   : > { %v1930_v55 = vpop.f32.mrf.mxu2 }
 0x934   : > { %v1953_v43 = vpop.f32.mrf.mxu3 }
 0x935   : > { %v1965_v44 = vmul.f32 %v1953_v43, %v1805_v42 }
 0x937   : > { %v1969_v46 = vmul.f32 %v1965_v44, %v1921_v61  ;;  %1979 = vperm.xlu1 %2440, %v1965_v44   ;;  %v2034_v61 = vld [vmem:[%s2737_s18 + $0x8] sm:$0xff] }
 0x939   : > { %v1973_v47 = vsub.f32 %v1809_v45, %v1969_v46  ;;  %v1698_v46 = vmul.f32 %v1683_v10, %v2928_v58 }
 0x93b   : > { %2007 = vperm.xlu2 %2442, %v1973_v47  }
 0x93c   : > { %v1956_v19 = vpop.f32.mrf.mxu3 }
 0x93d   : > { %v1966_v49 = vmul.f32 %v1956_v19, %v1806_v48  ;;  %v1701_v19 = vmul.f32 %v1693_v18, %v2943_v0  ;;  %v1702_v48 = vmul.f32 %v1693_v18, %v2945_v9 }
 0x93f   : > { %v1970_v53 = vmul.f32 %v1966_v49, %v1924_v13 }
 0x941   : > { %v1974_v1 = vsub.f32 %v1810_v52, %v1970_v53  ;;  %v1729_v52 = vadd.f32 %v1721_v5, %v1701_v19 }
 0x943   : > { %1984 = vperm.xlu2 %2442, %v1966_v49  }
 0x944   : > { %v1959_v34 = vpop.f32.mrf.mxu3 }
 0x945   : > { %v1967_v51 = vmul.f32 %v1959_v34, %v1807_v22  ;;  %v1726_v22 = vadd.f32 %v1711_v17, %v1698_v46 }
 0x947   : > { %1989 = vperm.xlu0 %2441, %v1967_v51   ;;  %v1971_v7 = vmul.f32 %v1967_v51, %v1927_v50 }
 0x949   : > { %v1975_v62 = vsub.f32 %v1811_v60, %v1971_v7 }
 0x94c   : > { %v1962_v28 = vpop.f32.mrf.mxu3 }
 0x94d   : > { %v1968_v2 = vmul.f32 %v1962_v28, %v1808_v54 }
 0x94f   : > { %v1972_v4 = vmul.f32 %v1968_v2, %v1930_v55  ;;  %2012 = vperm.xlu0 %2441, %v1974_v1   ;;  %1994 = vperm.xlu1 %2440, %v1968_v2   ;;  %v1699_v55 = vmul.f32 %v1688_v11, %v2933_v56  ;;  %v1700_v1 = vmul.f32 %v1688_v11, %v2935_v57  ;;  %v2035_v2 = vld [vmem:[%s2737_s18 + $0x10] sm:$0xff] }
 0x951   : > { %v1976_v59 = vsub.f32 %v1812_v3, %v1972_v4  ;;  %v2036_v3 = vld [vmem:[%s2737_s18 + $0x18] sm:$0xff]  ;;  %v1728_v18 = vadd.f32 %v3096_v14, %v1700_v1 }
 0x953   : > { %2022 = vperm.xlu2 %2442, %v1976_v59  }
 0x957   : > { %2017 = vperm.xlu1 %2440, %v1975_v62   ;;  %v2039_v62 = vld [vmem:[%s2737_s18 + $0x30] sm:$0xff] }
 0x995   : > { %v2008_v33 = vpop.permute.xlu2 %2007 }
 0x99d   : > { %v1985_v45 = vpop.permute.xlu2 %1984 }
 0x99e   : > { %v1999_v13 = vmul.f32 %v1985_v45, %v2969_v26  ;;  %v2000_v47 = vmul.f32 %v1985_v45, %v2971_v27  ;;  %v1730_v26 = vadd.f32 %v1721_v5, %v1702_v48 }
 0x9a9   : > { %v1980_v12 = vpop.permute.xlu1 %1979 }
 0x9aa   : > { %v1997_v29 = vmul.f32 %v1980_v12, %v2965_v23  ;;  %v1998_v32 = vmul.f32 %v1980_v12, %v2967_v24  ;;  %v1697_v24 = vmul.f32 %v1683_v10, %v2926_v8 }
 0x9ac   : > { %v2025_v16 = vadd.f32 %v2008_v33, %v1997_v29  ;;  %v2026_v39 = vadd.f32 %v2008_v33, %v1998_v32  ;;  %v1725_v49 = vadd.f32 %v1711_v17, %v1697_v24  ;;  %v1727_v17 = vadd.f32 %v3096_v14, %v1699_v55  ;;  %v2037_v32 = vld [vmem:[%s2737_s18 + $0x20] sm:$0xff]  ;;  %v2038_v33 = vld [vmem:[%s2737_s18 + $0x28] sm:$0xff] }
 0x9ad   : > { %v2023_v27 = vpop.permute.xlu2 %2022 }
 0x9ae   : > { %v2041_v25 = vadd.f32 %v2025_v16, %v1723_v35  ;;  %v2042_v40 = vadd.f32 %v2026_v39, %v1724_v36 }
 0x9b0   : > { %v2049_v42 = vmax.f32 %v2041_v25, 0.0  ;;  %v2050_v43 = vmax.f32 %v2042_v40, 0.0 }
 0x9b2   : > { %v2057_v44 = vadd.f32 %v2049_v42, %v2033_v41  ;;  %v2058_v6 = vadd.f32 %v2050_v43, %v2034_v61 }
 0x9b4   : > { %2065 = vst [vmem:[%s2737_s18] sm:$0xff] %v2057_v44 }
 0x9b5   : > { %2066 = vst [vmem:[%s2737_s18 + $0x8] sm:$0xff] %v2058_v6 }
 0x9b9   : > { %v1990_v23 = vpop.permute.xlu0 %1989 }
 0x9ba   : > { %v2001_v59 = vmul.f32 %v1990_v23, %v2975_v30  ;;  %v2002_v60 = vmul.f32 %v1990_v23, %v2977_v31 }
 0x9c1   : > { %v1995_v50 = vpop.permute.xlu1 %1994  ;;  %v2013_v34 = vpop.permute.xlu0 %2012 }
 0x9c2   : > { %v2003_v51 = vmul.f32 %v1995_v50, %v2985_v37  ;;  %v2004_v8 = vmul.f32 %v1995_v50, %v2987_v38  ;;  %v2027_v53 = vadd.f32 %v2013_v34, %v1999_v13  ;;  %v2028_v58 = vadd.f32 %v2013_v34, %v2000_v47 }
 0x9c4   : > { %v2031_v0 = vadd.f32 %v2023_v27, %v2003_v51  ;;  %v2032_v54 = vadd.f32 %v2023_v27, %v2004_v8  ;;  %v2043_v9 = vadd.f32 %v2027_v53, %v1725_v49  ;;  %v2044_v28 = vadd.f32 %v2028_v58, %v1726_v22 }
 0x9c6   : > { %v2047_v37 = vadd.f32 %v2031_v0, %v1729_v52  ;;  %v2048_v4 = vadd.f32 %v2032_v54, %v1730_v26  ;;  %v2051_v38 = vmax.f32 %v2043_v9, 0.0  ;;  %v2052_v7 = vmax.f32 %v2044_v28, 0.0 }
 0x9c8   : > { %v2055_v10 = vmax.f32 %v2047_v37, 0.0  ;;  %v2056_v56 = vmax.f32 %v2048_v4, 0.0  ;;  %v2059_v57 = vadd.f32 %v2051_v38, %v2035_v2  ;;  %v2060_v15 = vadd.f32 %v2052_v7, %v2036_v3 }
 0x9c9   : > { %v2018_v11 = vpop.permute.xlu1 %2017 }
 0x9ca   : > { %v2063_v12 = vadd.f32 %v2055_v10, %v2039_v62  ;;  %v2064_v30 = vadd.f32 %v2056_v56, %v2040_v63  ;;  %2067 = vst [vmem:[%s2737_s18 + $0x10] sm:$0xff] %v2059_v57  ;;  %v2029_v31 = vadd.f32 %v2018_v11, %v2001_v59  ;;  %v2030_v20 = vadd.f32 %v2018_v11, %v2002_v60 }
 0x9cb   : > { %2068 = vst [vmem:[%s2737_s18 + $0x18] sm:$0xff] %v2060_v15 }
 0x9cc   : > { %2071 = vst [vmem:[%s2737_s18 + $0x30] sm:$0xff] %v2063_v12  ;;  %v2045_v21 = vadd.f32 %v2029_v31, %v1727_v17  ;;  %v2046_v29 = vadd.f32 %v2030_v20, %v1728_v18 }
 0x9cd   : > { %2072 = vst [vmem:[%s2737_s18 + $0x38] sm:$0xff] %v2064_v30 }
 0x9ce   : > { %v2053_v35 = vmax.f32 %v2045_v21, 0.0  ;;  %v2054_v36 = vmax.f32 %v2046_v29, 0.0 }
 0x9d0   : > { %v2061_v16 = vadd.f32 %v2053_v35, %v2037_v32  ;;  %v2062_v39 = vadd.f32 %v2054_v36, %v2038_v33 }
 0x9d2   : > { %2069 = vst [vmem:[%s2737_s18 + $0x20] sm:$0xff] %v2061_v16 }
 0x9d3   : > { %2070 = vst [vmem:[%s2737_s18 + $0x28] sm:$0xff] %v2062_v39 }
 0x9d4 PF: > { %s3213_s5 = sld [smem:[#allocation7_spill]] }
 0x9d5   : > { %s3214_s1 = sld [smem:[#allocation5_spill]] }
 0x9d6   : > { %s3215_s22 = sld [smem:[#allocation6_spill]] }
 0x9d7   : > { %s3216_s2 = sld [smem:[#allocation8_spill]] }
 0x9d8   : > { %s3217_s23 = sld [smem:[#allocation9_spill]] }
 0x9da   : > { %s37_s24 = sadd.s32 1, %s3213_s5  }
 0x9db   : > { %p34_p3 = scmp.ge.s32.totalorder %s37_s24, 6  }
 0x9dd   :  { %36 = sbr.rel (!%p34_p3) target bundleno = 31 (0x1f), region = 162 }

</bundles_post_ra>
